<compile_context>
chip_gen: v7x
topology: tpu7x:2x2x1
jax: 0.10.0
libtpu: 0.0.40
codegen_flags: <defaults>
</compile_context>

<pallas_src>
from functools import partial

import jax
import jax.numpy as jnp
from jax.experimental import pallas as pl
from jax.experimental.pallas import tpu as pltpu

LANE = 128


def _round_up(x, m):
    return (x + m - 1) // m * m


def _pad_axis(a, target, axis):
    pad = target - a.shape[axis]
    if pad <= 0:
        return a
    widths = [(0, 0)] * a.ndim
    widths[axis] = (0, pad)
    return jnp.pad(a, widths)


# ----------------------------------------------------------------------------
# Kernel 1: 1x1 conv (matmul, BN scale pre-folded into weights) + shift + ReLU
# ----------------------------------------------------------------------------
def _pconv_kernel(x_ref, w_ref, shift_ref, o_ref):
    y = jnp.dot(x_ref[...], w_ref[...], preferred_element_type=jnp.float32)
    o_ref[...] = jnp.maximum(y + shift_ref[...], 0.0).astype(o_ref.dtype)


def pointwise_conv_bn_relu(x2d, w, shift, tm=512):
    """x2d: (M, Cin_p) bf16; w: (Cin_p, Cmid_p) bf16; shift: (1, Cmid_p) f32."""
    M, cin = x2d.shape
    cmid = w.shape[1]
    # Keep tiles large, but guarantee >= 2 grid steps when possible (megacore);
    # non-divisible M handled by row padding instead of a hard assert.
    tm = max(8, min(tm, _round_up(pl.cdiv(M, 2), 8)))
    Mp = _round_up(M, tm)
    if Mp != M:
        x2d = jnp.pad(x2d, ((0, Mp - M), (0, 0)))
    out = pl.pallas_call(
        _pconv_kernel,
        out_shape=jax.ShapeDtypeStruct((Mp, cmid), jnp.float32),
        grid_spec=pltpu.PrefetchScalarGridSpec(
            num_scalar_prefetch=0,
            grid=(Mp // tm,),
            in_specs=[
                pl.BlockSpec((tm, cin), lambda i: (i, 0)),
                pl.BlockSpec((cin, cmid), lambda i: (0, 0)),
                pl.BlockSpec((1, cmid), lambda i: (0, 0)),
            ],
            out_specs=pl.BlockSpec((tm, cmid), lambda i: (i, 0)),
        ),
        compiler_params=pltpu.CompilerParams(dimension_semantics=("parallel",)),
    )(x2d, w, shift)
    return out[:M]


# ----------------------------------------------------------------------------
# Kernel 2 (fused): 3x3 conv (pad=1, BN folded) + ReLU
#                   + channel gate: spatial mean -> 1x1 conv(+bias, BN folded)
#                     -> sigmoid -> multiply.  One HBM read + one HBM write.
# ----------------------------------------------------------------------------
def _fused_conv3_gate_kernel(x_ref, w_ref, shift_ref, wa_ref, ba_ref, o_ref,
                             xsh_ref):
    # x_ref:     (1, H, W, Cip)   f32   concatenated features (lane padded)
    # w_ref:     (3, 3, Cip, Cop) bf16  3x3 conv weight (BN scale folded)
    # shift_ref: (1, Cop)         f32   conv_last BN shift
    # wa_ref:    (Cop, Cop)       f32   gate 1x1 conv weight (BN folded)
    # ba_ref:    (1, Cop)         f32   gate bias (conv bias + BN folded)
    # o_ref:     (1, H, W, Cop)   f32
    # xsh_ref:   VMEM (3, H+2, W, Cip) f32 scratch with halo rows + column shifts
    _, H, W, Cop = o_ref.shape
    Cip = x_ref.shape[3]

    xb = x_ref[0]                                      # (H, W, Cip)
    xsh_ref[...] = jnp.zeros_like(xsh_ref)             # zero halo every step (megacore-safe)
    xsh_ref[1, 1:H + 1, :, :] = xb                     # kw = 1 taps (no column shift)
    xsh_ref[0, 1:H + 1, 1:W, :] = xb[:, :W - 1, :]     # kw = 0 taps (reads col j-1)
    xsh_ref[2, 1:H + 1, :W - 1, :] = xb[:, 1:, :]      # kw = 2 taps (reads col j+1)

    acc = jnp.zeros((H * W, Cop), jnp.float32)
    for kh in range(3):                                # 9 aligned, full-tile MXU matmuls
        for kw in range(3):
            patch = xsh_ref[kw, kh:kh + H, :, :].reshape(H * W, Cip)
            acc = acc + jnp.dot(patch.astype(jnp.bfloat16), w_ref[kh, kw],
                                preferred_element_type=jnp.float32)

    y = jnp.maximum(acc + shift_ref[...], 0.0)         # BN shift + ReLU (f32 epilogue)
    # channel gate (Dropout2d is identity in eval)
    m = jnp.mean(y, axis=0, keepdims=True)             # (1, Cop) spatial mean, f32
    z = jnp.dot(m, wa_ref[...], preferred_element_type=jnp.float32) + ba_ref[...]
    s = pl.reciprocal(1.0 + jnp.exp(-z), approx=True)  # sigmoid, divide on the EUP
    o_ref[...] = (y * s).reshape(1, H, W, Cop).astype(o_ref.dtype)


def fused_conv3_gate(cat, w, shift, w_attn, b_attn):
    N, H, W, Cip = cat.shape
    Cop = w.shape[-1]
    # cat is dead after this call: alias it into the output when shapes match.
    aliases = {0: 0} if Cip == Cop else {}
    # TODO(synk): for large H*W, tile spatially (halo row tiles + carried channel
    # sums); whole-image blocks are comfortably within VMEM at these sizes.
    return pl.pallas_call(
        _fused_conv3_gate_kernel,
        out_shape=jax.ShapeDtypeStruct((N, H, W, Cop), cat.dtype),
        grid_spec=pltpu.PrefetchScalarGridSpec(
            num_scalar_prefetch=0,
            grid=(N,),
            in_specs=[
                pl.BlockSpec((1, H, W, Cip), lambda n: (n, 0, 0, 0)),
                pl.BlockSpec((3, 3, Cip, Cop), lambda n: (0, 0, 0, 0)),
                pl.BlockSpec((1, Cop), lambda n: (0, 0)),
                pl.BlockSpec((Cop, Cop), lambda n: (0, 0)),
                pl.BlockSpec((1, Cop), lambda n: (0, 0)),
            ],
            out_specs=pl.BlockSpec((1, H, W, Cop), lambda n: (n, 0, 0, 0)),
            scratch_shapes=[pltpu.VMEM((3, H + 2, W, Cip), jnp.float32)],
        ),
        compiler_params=pltpu.CompilerParams(dimension_semantics=("parallel",)),
        input_output_aliases=aliases,
    )(cat, w, shift, w_attn, b_attn)


# ----------------------------------------------------------------------------
# JAX glue: adaptive average pool + bilinear upsample (align_corners=False)
# ----------------------------------------------------------------------------
def adaptive_avg_pool(x, s):
    n, h, w, c = x.shape
    # TODO(synk): non-divisible adaptive pooling (variable windows) not implemented.
    assert h % s == 0 and w % s == 0
    return x.reshape(n, s, h // s, s, w // s, c).mean(axis=(2, 4))


def bilinear_upsample(x, out_h, out_w):
    n, h, w, c = x.shape
    if h == 1 and w == 1:
        return jnp.broadcast_to(x, (n, out_h, out_w, c))

    def idx(out_size, in_size):
        scale = in_size / out_size
        src = (jnp.arange(out_size, dtype=jnp.float32) + 0.5) * scale - 0.5
        src = jnp.maximum(src, 0.0)                 # PyTorch align_corners=False clamp
        i0 = jnp.clip(jnp.floor(src).astype(jnp.int32), 0, in_size - 1)
        i1 = jnp.minimum(i0 + 1, in_size - 1)
        lam = src - i0.astype(jnp.float32)
        return i0, i1, lam

    y0, y1, ly = idx(out_h, h)
    x0, x1, lx = idx(out_w, w)
    r0, r1 = x[:, y0], x[:, y1]                     # (n, out_h, w, c)
    v00, v01 = r0[:, :, x0], r0[:, :, x1]           # (n, out_h, out_w, c)
    v10, v11 = r1[:, :, x0], r1[:, :, x1]
    ly = ly[None, :, None, None]
    lx = lx[None, None, :, None]
    top = v00 * (1.0 - lx) + v01 * lx
    bot = v10 * (1.0 - lx) + v11 * lx
    return top * (1.0 - ly) + bot * ly


# ----------------------------------------------------------------------------
# Parameters (deterministic, synthetic) with BN scale folded into conv weights
# ----------------------------------------------------------------------------
def fold_bn(gamma, beta, mean, var, eps=1e-5):
    scale = gamma / jnp.sqrt(var + eps)
    shift = beta - mean * scale
    return scale, shift


def make_params(key, cin=4, pool_scales=(1, 2)):
    cmid = cin // len(pool_scales)
    ccat = cin + len(pool_scales) * cmid
    ks = jax.random.split(key, 16)

    def bn(k, c):
        k1, k2, k3, k4 = jax.random.split(k, 4)
        gamma = jax.random.uniform(k1, (c,), jnp.float32, 0.5, 1.5)
        beta = 0.1 * jax.random.normal(k2, (c,), jnp.float32)
        mean = 0.1 * jax.random.normal(k3, (c,), jnp.float32)
        var = jax.random.uniform(k4, (c,), jnp.float32, 0.5, 1.5)
        return fold_bn(gamma, beta, mean, var)

    w_point = 0.1 * jax.random.normal(ks[0], (cin, cmid), jnp.float32)
    s_pt, sh_pt = bn(ks[1], cmid)
    w_last = 0.1 * jax.random.normal(ks[2], (3, 3, ccat, cin), jnp.float32)
    s_l, sh_l = bn(ks[3], cin)
    w_attn = 0.1 * jax.random.normal(ks[4], (cin, cin), jnp.float32)
    b_attn = 0.1 * jax.random.normal(ks[5], (cin,), jnp.float32)
    s_a, sh_a = bn(ks[6], cin)

    # BN scale folded into the conv weights; kernels only apply the shift.
    return {
        "w_point": w_point * s_pt[None, :],
        "point_shift": sh_pt[None, :],
        "w_last": w_last * s_l[None, None, None, :],
        "last_shift": sh_l[None, :],
        "w_attn": w_attn * s_a[None, :],
        "b_attn": (b_attn * s_a + sh_a)[None, :],
    }


# ----------------------------------------------------------------------------
# Forward pass (accepts / returns NCHW like the PyTorch module)
# ----------------------------------------------------------------------------
@partial(jax.jit, static_argnames=("pool_scales",))
def psp_forward(x_nchw, p, pool_scales=(1, 2)):
    x = jnp.transpose(x_nchw, (0, 2, 3, 1))                   # NCHW -> NHWC
    N, H, W, Cin = x.shape
    Cmid = p["w_point"].shape[1]
    Cout = p["w_last"].shape[-1]

    cin_p = _round_up(Cin, LANE)
    cmid_p = _round_up(Cmid, LANE)

    # pointConv: 1x1 conv + BN + ReLU (Pallas matmul; bf16 operands, lane padded)
    x2d = _pad_axis(x.reshape(N * H * W, Cin), cin_p, 1).astype(jnp.bfloat16)
    w_pt = _pad_axis(_pad_axis(p["w_point"], cin_p, 0), cmid_p, 1).astype(jnp.bfloat16)
    sh_pt = _pad_axis(p["point_shift"], cmid_p, 1)
    xm = pointwise_conv_bn_relu(x2d, w_pt, sh_pt)[:, :Cmid].reshape(N, H, W, Cmid)

    # pyramid pooling of the pointConv output, bilinear upsample, concat with input
    feats = [x]
    for s in pool_scales:
        feats.append(bilinear_upsample(adaptive_avg_pool(xm, s), H, W))
    cat = jnp.concatenate(feats, axis=-1)                     # (N, H, W, Ccat) f32

    ccat_p = _round_up(cat.shape[-1], LANE)
    cout_p = _round_up(Cout, LANE)
    cat_p = _pad_axis(cat, ccat_p, 3)
    w_last = _pad_axis(_pad_axis(p["w_last"], ccat_p, 2), cout_p, 3).astype(jnp.bfloat16)
    sh_last = _pad_axis(p["last_shift"], cout_p, 1)
    w_attn = _pad_axis(_pad_axis(p["w_attn"], cout_p, 0), cout_p, 1)
    b_attn = _pad_axis(p["b_attn"], cout_p, 1)

    # fused: conv_last (3x3 + BN + ReLU, Dropout2d identity in eval) + channel gate
    out = fused_conv3_gate(cat_p, w_last, sh_last, w_attn, b_attn)[..., :Cout]
    return jnp.transpose(out, (0, 3, 1, 2))                   # NHWC -> NCHW


if __name__ == "__main__":
    key = jax.random.PRNGKey(0)
    k_in, k_par = jax.random.split(key)

    N, Cin, H, W = 2, 4, 16, 16
    x = jax.random.normal(k_in, (N, Cin, H, W), jnp.float32)
    params = make_params(k_par, cin=Cin, pool_scales=(1, 2))

    out = psp_forward(x, params, pool_scales=(1, 2))
    out = jax.block_until_ready(out)
    assert out.shape == (N, Cin, H, W)
    assert bool(jnp.all(jnp.isfinite(out)))
    print("KERNEL_OK")
</pallas_src>

<mosaic_0001>
module attributes {stable_mosaic.version = 11 : i64} {
  func.func @_pconv_kernel(%arg0: i32, %arg1: memref<256x128xbf16, #tpu.memory_space<vmem>>, %arg2: memref<128x128xbf16, #tpu.memory_space<vmem>>, %arg3: memref<1x128xf32, #tpu.memory_space<vmem>>, %arg4: memref<256x128xf32, #tpu.memory_space<vmem>>) attributes {dimension_semantics = [#tpu.dimension_semantics<parallel>], iteration_bounds = array<i64: 2>, scalar_prefetch = 0 : i64, scratch_operands = 0 : i64, tpu.core_type = #tpu.core_type<tc>, window_params = [{transform_indices = @transform_0, window_bounds = array<i64: 256, 128>}, {pipeline_mode = #tpu.pipeline_mode<synchronous>, transform_indices = @transform_1, window_bounds = array<i64: 128, 128>}, {pipeline_mode = #tpu.pipeline_mode<synchronous>, transform_indices = @transform_2, window_bounds = array<i64: 1, 128>}, {transform_indices = @transform_3, window_bounds = array<i64: 256, 128>}]} {
    %c0 = arith.constant 0 : index
    %c0_0 = arith.constant 0 : index
    %0 = vector.load %arg1[%c0, %c0_0] : memref<256x128xbf16, #tpu.memory_space<vmem>>, vector<256x128xbf16>
    %c0_1 = arith.constant 0 : index
    %c0_2 = arith.constant 0 : index
    %1 = vector.load %arg2[%c0_1, %c0_2] : memref<128x128xbf16, #tpu.memory_space<vmem>>, vector<128x128xbf16>
    %cst = arith.constant dense<0.000000e+00> : vector<256x128xf32>
    %2 = tpu.matmul %0, %1, %cst {dimension_numbers = #tpu.dot_dimension_numbers<[1], [0], [0], [1], [0, 0, 1, 1], [], []>} : vector<256x128xbf16>, vector<128x128xbf16>, vector<256x128xf32> -> vector<256x128xf32>
    %c0_3 = arith.constant 0 : index
    %c0_4 = arith.constant 0 : index
    %3 = vector.load %arg3[%c0_3, %c0_4] : memref<1x128xf32, #tpu.memory_space<vmem>>, vector<1x128xf32>
    %4 = vector.broadcast %3 : vector<1x128xf32> to vector<256x128xf32>
    %5 = arith.addf %2, %4 : vector<256x128xf32>
    %cst_5 = arith.constant 0.000000e+00 : f32
    %6 = vector.broadcast %cst_5 : f32 to vector<256x128xf32>
    %7 = arith.maximumf %5, %6 : vector<256x128xf32>
    %c0_6 = arith.constant 0 : index
    %c0_7 = arith.constant 0 : index
    %8 = vector.load %arg4[%c0_6, %c0_7] : memref<256x128xf32, #tpu.memory_space<vmem>>, vector<256x128xf32>
    tpu.vector_store %arg4[%c0_6, %c0_7], %7 {strides = array<i32>} : memref<256x128xf32, #tpu.memory_space<vmem>>, vector<256x128xf32>,
    return
  }
  func.func @transform_0(%arg0: i32) -> (i32, i32) {
    %c0_i32 = arith.constant 0 : i32
    %c0_i32_0 = arith.constant 0 : i32
    return %arg0, %c0_i32 : i32, i32
  }
  func.func @transform_1(%arg0: i32) -> (i32, i32) {
    %c0_i32 = arith.constant 0 : i32
    %c0_i32_0 = arith.constant 0 : i32
    %c0_i32_1 = arith.constant 0 : i32
    return %c0_i32, %c0_i32_0 : i32, i32
  }
  func.func @transform_2(%arg0: i32) -> (i32, i32) {
    %c0_i32 = arith.constant 0 : i32
    %c0_i32_0 = arith.constant 0 : i32
    %c0_i32_1 = arith.constant 0 : i32
    return %c0_i32, %c0_i32_0 : i32, i32
  }
  func.func @transform_3(%arg0: i32) -> (i32, i32) {
    %c0_i32 = arith.constant 0 : i32
    %c0_i32_0 = arith.constant 0 : i32
    return %arg0, %c0_i32 : i32, i32
  }
}

module attributes {stable_mosaic.version = 11 : i64} {
  func.func @_fused_conv3_gate_kernel(%arg0: i32, %arg1: memref<1x16x16x128xf32, #tpu.memory_space<vmem>>, %arg2: memref<3x3x128x128xbf16, #tpu.memory_space<vmem>>, %arg3: memref<1x128xf32, #tpu.memory_space<vmem>>, %arg4: memref<128x128xf32, #tpu.memory_space<vmem>>, %arg5: memref<1x128xf32, #tpu.memory_space<vmem>>, %arg6: memref<1x16x16x128xf32, #tpu.memory_space<vmem>>, %arg7: memref<3x18x16x128xf32, #tpu.memory_space<vmem>>) attributes {dimension_semantics = [#tpu.dimension_semantics<parallel>], iteration_bounds = array<i64: 2>, scalar_prefetch = 0 : i64, scratch_operands = 1 : i64, tpu.core_type = #tpu.core_type<tc>, window_params = [{transform_indices = @transform_0, window_bounds = array<i64: 1, 16, 16, 128>}, {pipeline_mode = #tpu.pipeline_mode<synchronous>, transform_indices = @transform_1, window_bounds = array<i64: 3, 3, 128, 128>}, {pipeline_mode = #tpu.pipeline_mode<synchronous>, transform_indices = @transform_2, window_bounds = array<i64: 1, 128>}, {pipeline_mode = #tpu.pipeline_mode<synchronous>, transform_indices = @transform_3, window_bounds = array<i64: 128, 128>}, {pipeline_mode = #tpu.pipeline_mode<synchronous>, transform_indices = @transform_4, window_bounds = array<i64: 1, 128>}, {transform_indices = @transform_5, window_bounds = array<i64: 1, 16, 16, 128>}]} {
    %c0 = arith.constant 0 : index
    %c0_0 = arith.constant 0 : index
    %c0_1 = arith.constant 0 : index
    %c0_2 = arith.constant 0 : index
    %0 = vector.load %arg1[%c0, %c0_0, %c0_1, %c0_2] : memref<1x16x16x128xf32, #tpu.memory_space<vmem>>, vector<1x16x16x128xf32>
    %1 = vector.shape_cast %0 : vector<1x16x16x128xf32> to vector<16x16x128xf32>
    %cst = arith.constant 0.000000e+00 : f32
    %2 = vector.broadcast %cst : f32 to vector<3x18x16x128xf32>
    %c0_3 = arith.constant 0 : index
    %c0_4 = arith.constant 0 : index
    %c0_5 = arith.constant 0 : index
    %c0_6 = arith.constant 0 : index
    %3 = vector.load %arg7[%c0_3, %c0_4, %c0_5, %c0_6] : memref<3x18x16x128xf32, #tpu.memory_space<vmem>>, vector<3x18x16x128xf32>
    tpu.vector_store %arg7[%c0_3, %c0_4, %c0_5, %c0_6], %2 {strides = array<i32>} : memref<3x18x16x128xf32, #tpu.memory_space<vmem>>, vector<3x18x16x128xf32>,
    %c1 = arith.constant 1 : index
    %c1_7 = arith.constant 1 : index
    %c0_8 = arith.constant 0 : index
    %c0_9 = arith.constant 0 : index
    %4 = vector.load %arg7[%c1, %c1_7, %c0_8, %c0_9] : memref<3x18x16x128xf32, #tpu.memory_space<vmem>>, vector<1x16x16x128xf32>
    %5 = vector.shape_cast %4 : vector<1x16x16x128xf32> to vector<16x16x128xf32>
    %6 = vector.shape_cast %1 : vector<16x16x128xf32> to vector<1x16x16x128xf32>
    tpu.vector_store %arg7[%c1, %c1_7, %c0_8, %c0_9], %6 {strides = array<i32>} : memref<3x18x16x128xf32, #tpu.memory_space<vmem>>, vector<1x16x16x128xf32>,
    %7 = vector.extract_strided_slice %1 {offsets = [0, 0, 0], sizes = [16, 15, 128], strides = [1, 1, 1]} : vector<16x16x128xf32> to vector<16x15x128xf32>
    %c0_10 = arith.constant 0 : index
    %c1_11 = arith.constant 1 : index
    %c1_12 = arith.constant 1 : index
    %c0_13 = arith.constant 0 : index
    %8 = vector.load %arg7[%c0_10, %c1_11, %c1_12, %c0_13] : memref<3x18x16x128xf32, #tpu.memory_space<vmem>>, vector<1x16x15x128xf32>
    %9 = vector.shape_cast %8 : vector<1x16x15x128xf32> to vector<16x15x128xf32>
    %10 = vector.shape_cast %7 : vector<16x15x128xf32> to vector<1x16x15x128xf32>
    tpu.vector_store %arg7[%c0_10, %c1_11, %c1_12, %c0_13], %10 {strides = array<i32>} : memref<3x18x16x128xf32, #tpu.memory_space<vmem>>, vector<1x16x15x128xf32>,
    %11 = vector.extract_strided_slice %1 {offsets = [0, 1, 0], sizes = [16, 15, 128], strides = [1, 1, 1]} : vector<16x16x128xf32> to vector<16x15x128xf32>
    %c2 = arith.constant 2 : index
    %c1_14 = arith.constant 1 : index
    %c0_15 = arith.constant 0 : index
    %c0_16 = arith.constant 0 : index
    %12 = vector.load %arg7[%c2, %c1_14, %c0_15, %c0_16] : memref<3x18x16x128xf32, #tpu.memory_space<vmem>>, vector<1x16x15x128xf32>
    %13 = vector.shape_cast %12 : vector<1x16x15x128xf32> to vector<16x15x128xf32>
    %14 = vector.shape_cast %11 : vector<16x15x128xf32> to vector<1x16x15x128xf32>
    tpu.vector_store %arg7[%c2, %c1_14, %c0_15, %c0_16], %14 {strides = array<i32>} : memref<3x18x16x128xf32, #tpu.memory_space<vmem>>, vector<1x16x15x128xf32>,
    %cst_17 = arith.constant 0.000000e+00 : f32
    %15 = vector.broadcast %cst_17 : f32 to vector<256x128xf32>
    %c0_18 = arith.constant 0 : index
    %c0_19 = arith.constant 0 : index
    %c0_20 = arith.constant 0 : index
    %c0_21 = arith.constant 0 : index
    %16 = vector.load %arg7[%c0_18, %c0_19, %c0_20, %c0_21] : memref<3x18x16x128xf32, #tpu.memory_space<vmem>>, vector<1x16x16x128xf32>
    %17 = vector.shape_cast %16 : vector<1x16x16x128xf32> to vector<16x16x128xf32>
    %18 = vector.shape_cast %17 : vector<16x16x128xf32> to vector<256x128xf32>
    %19 = arith.truncf %18 : vector<256x128xf32> to vector<256x128xbf16>
    %c0_22 = arith.constant 0 : index
    %c0_23 = arith.constant 0 : index
    %c0_24 = arith.constant 0 : index
    %c0_25 = arith.constant 0 : index
    %20 = vector.load %arg2[%c0_22, %c0_23, %c0_24, %c0_25] : memref<3x3x128x128xbf16, #tpu.memory_space<vmem>>, vector<1x1x128x128xbf16>
    %21 = vector.shape_cast %20 : vector<1x1x128x128xbf16> to vector<128x128xbf16>
    %cst_26 = arith.constant dense<0.000000e+00> : vector<256x128xf32>
    %22 = tpu.matmul %19, %21, %cst_26 {dimension_numbers = #tpu.dot_dimension_numbers<[1], [0], [0], [1], [0, 0, 1, 1], [], []>} : vector<256x128xbf16>, vector<128x128xbf16>, vector<256x128xf32> -> vector<256x128xf32>
    %23 = arith.addf %15, %22 : vector<256x128xf32>
    %c1_27 = arith.constant 1 : index
    %c0_28 = arith.constant 0 : index
    %c0_29 = arith.constant 0 : index
    %c0_30 = arith.constant 0 : index
    %24 = vector.load %arg7[%c1_27, %c0_28, %c0_29, %c0_30] : memref<3x18x16x128xf32, #tpu.memory_space<vmem>>, vector<1x16x16x128xf32>
    %25 = vector.shape_cast %24 : vector<1x16x16x128xf32> to vector<16x16x128xf32>
    %26 = vector.shape_cast %25 : vector<16x16x128xf32> to vector<256x128xf32>
    %27 = arith.truncf %26 : vector<256x128xf32> to vector<256x128xbf16>
    %c0_31 = arith.constant 0 : index
    %c1_32 = arith.constant 1 : index
    %c0_33 = arith.constant 0 : index
    %c0_34 = arith.constant 0 : index
    %28 = vector.load %arg2[%c0_31, %c1_32, %c0_33, %c0_34] : memref<3x3x128x128xbf16, #tpu.memory_space<vmem>>, vector<1x1x128x128xbf16>
    %29 = vector.shape_cast %28 : vector<1x1x128x128xbf16> to vector<128x128xbf16>
    %cst_35 = arith.constant dense<0.000000e+00> : vector<256x128xf32>
    %30 = tpu.matmul %27, %29, %cst_35 {dimension_numbers = #tpu.dot_dimension_numbers<[1], [0], [0], [1], [0, 0, 1, 1], [], []>} : vector<256x128xbf16>, vector<128x128xbf16>, vector<256x128xf32> -> vector<256x128xf32>
    %31 = arith.addf %23, %30 : vector<256x128xf32>
    %c2_36 = arith.constant 2 : index
    %c0_37 = arith.constant 0 : index
    %c0_38 = arith.constant 0 : index
    %c0_39 = arith.constant 0 : index
    %32 = vector.load %arg7[%c2_36, %c0_37, %c0_38, %c0_39] : memref<3x18x16x128xf32, #tpu.memory_space<vmem>>, vector<1x16x16x128xf32>
    %33 = vector.shape_cast %32 : vector<1x16x16x128xf32> to vector<16x16x128xf32>
    %34 = vector.shape_cast %33 : vector<16x16x128xf32> to vector<256x128xf32>
    %35 = arith.truncf %34 : vector<256x128xf32> to vector<256x128xbf16>
    %c0_40 = arith.constant 0 : index
    %c2_41 = arith.constant 2 : index
    %c0_42 = arith.constant 0 : index
    %c0_43 = arith.constant 0 : index
    %36 = vector.load %arg2[%c0_40, %c2_41, %c0_42, %c0_43] : memref<3x3x128x128xbf16, #tpu.memory_space<vmem>>, vector<1x1x128x128xbf16>
    %37 = vector.shape_cast %36 : vector<1x1x128x128xbf16> to vector<128x128xbf16>
    %cst_44 = arith.constant dense<0.000000e+00> : vector<256x128xf32>
    %38 = tpu.matmul %35, %37, %cst_44 {dimension_numbers = #tpu.dot_dimension_numbers<[1], [0], [0], [1], [0, 0, 1, 1], [], []>} : vector<256x128xbf16>, vector<128x128xbf16>, vector<256x128xf32> -> vector<256x128xf32>
    %39 = arith.addf %31, %38 : vector<256x128xf32>
    %c0_45 = arith.constant 0 : index
    %c1_46 = arith.constant 1 : index
    %c0_47 = arith.constant 0 : index
    %c0_48 = arith.constant 0 : index
    %40 = vector.load %arg7[%c0_45, %c1_46, %c0_47, %c0_48] : memref<3x18x16x128xf32, #tpu.memory_space<vmem>>, vector<1x16x16x128xf32>
    %41 = vector.shape_cast %40 : vector<1x16x16x128xf32> to vector<16x16x128xf32>
    %42 = vector.shape_cast %41 : vector<16x16x128xf32> to vector<256x128xf32>
    %43 = arith.truncf %42 : vector<256x128xf32> to vector<256x128xbf16>
    %c1_49 = arith.constant 1 : index
    %c0_50 = arith.constant 0 : index
    %c0_51 = arith.constant 0 : index
    %c0_52 = arith.constant 0 : index
    %44 = vector.load %arg2[%c1_49, %c0_50, %c0_51, %c0_52] : memref<3x3x128x128xbf16, #tpu.memory_space<vmem>>, vector<1x1x128x128xbf16>
    %45 = vector.shape_cast %44 : vector<1x1x128x128xbf16> to vector<128x128xbf16>
    %cst_53 = arith.constant dense<0.000000e+00> : vector<256x128xf32>
    %46 = tpu.matmul %43, %45, %cst_53 {dimension_numbers = #tpu.dot_dimension_numbers<[1], [0], [0], [1], [0, 0, 1, 1], [], []>} : vector<256x128xbf16>, vector<128x128xbf16>, vector<256x128xf32> -> vector<256x128xf32>
    %47 = arith.addf %39, %46 : vector<256x128xf32>
    %c1_54 = arith.constant 1 : index
    %c1_55 = arith.constant 1 : index
    %c0_56 = arith.constant 0 : index
    %c0_57 = arith.constant 0 : index
    %48 = vector.load %arg7[%c1_54, %c1_55, %c0_56, %c0_57] : memref<3x18x16x128xf32, #tpu.memory_space<vmem>>, vector<1x16x16x128xf32>
    %49 = vector.shape_cast %48 : vector<1x16x16x128xf32> to vector<16x16x128xf32>
    %50 = vector.shape_cast %49 : vector<16x16x128xf32> to vector<256x128xf32>
    %51 = arith.truncf %50 : vector<256x128xf32> to vector<256x128xbf16>
    %c1_58 = arith.constant 1 : index
    %c1_59 = arith.constant 1 : index
    %c0_60 = arith.constant 0 : index
    %c0_61 = arith.constant 0 : index
    %52 = vector.load %arg2[%c1_58, %c1_59, %c0_60, %c0_61] : memref<3x3x128x128xbf16, #tpu.memory_space<vmem>>, vector<1x1x128x128xbf16>
    %53 = vector.shape_cast %52 : vector<1x1x128x128xbf16> to vector<128x128xbf16>
    %cst_62 = arith.constant dense<0.000000e+00> : vector<256x128xf32>
    %54 = tpu.matmul %51, %53, %cst_62 {dimension_numbers = #tpu.dot_dimension_numbers<[1], [0], [0], [1], [0, 0, 1, 1], [], []>} : vector<256x128xbf16>, vector<128x128xbf16>, vector<256x128xf32> -> vector<256x128xf32>
    %55 = arith.addf %47, %54 : vector<256x128xf32>
    %c2_63 = arith.constant 2 : index
    %c1_64 = arith.constant 1 : index
    %c0_65 = arith.constant 0 : index
    %c0_66 = arith.constant 0 : index
    %56 = vector.load %arg7[%c2_63, %c1_64, %c0_65, %c0_66] : memref<3x18x16x128xf32, #tpu.memory_space<vmem>>, vector<1x16x16x128xf32>
    %57 = vector.shape_cast %56 : vector<1x16x16x128xf32> to vector<16x16x128xf32>
    %58 = vector.shape_cast %57 : vector<16x16x128xf32> to vector<256x128xf32>
    %59 = arith.truncf %58 : vector<256x128xf32> to vector<256x128xbf16>
    %c1_67 = arith.constant 1 : index
    %c2_68 = arith.constant 2 : index
    %c0_69 = arith.constant 0 : index
    %c0_70 = arith.constant 0 : index
    %60 = vector.load %arg2[%c1_67, %c2_68, %c0_69, %c0_70] : memref<3x3x128x128xbf16, #tpu.memory_space<vmem>>, vector<1x1x128x128xbf16>
    %61 = vector.shape_cast %60 : vector<1x1x128x128xbf16> to vector<128x128xbf16>
    %cst_71 = arith.constant dense<0.000000e+00> : vector<256x128xf32>
    %62 = tpu.matmul %59, %61, %cst_71 {dimension_numbers = #tpu.dot_dimension_numbers<[1], [0], [0], [1], [0, 0, 1, 1], [], []>} : vector<256x128xbf16>, vector<128x128xbf16>, vector<256x128xf32> -> vector<256x128xf32>
    %63 = arith.addf %55, %62 : vector<256x128xf32>
    %c0_72 = arith.constant 0 : index
    %c2_73 = arith.constant 2 : index
    %c0_74 = arith.constant 0 : index
    %c0_75 = arith.constant 0 : index
    %64 = vector.load %arg7[%c0_72, %c2_73, %c0_74, %c0_75] : memref<3x18x16x128xf32, #tpu.memory_space<vmem>>, vector<1x16x16x128xf32>
    %65 = vector.shape_cast %64 : vector<1x16x16x128xf32> to vector<16x16x128xf32>
    %66 = vector.shape_cast %65 : vector<16x16x128xf32> to vector<256x128xf32>
    %67 = arith.truncf %66 : vector<256x128xf32> to vector<256x128xbf16>
    %c2_76 = arith.constant 2 : index
    %c0_77 = arith.constant 0 : index
    %c0_78 = arith.constant 0 : index
    %c0_79 = arith.constant 0 : index
    %68 = vector.load %arg2[%c2_76, %c0_77, %c0_78, %c0_79] : memref<3x3x128x128xbf16, #tpu.memory_space<vmem>>, vector<1x1x128x128xbf16>
    %69 = vector.shape_cast %68 : vector<1x1x128x128xbf16> to vector<128x128xbf16>
    %cst_80 = arith.constant dense<0.000000e+00> : vector<256x128xf32>
    %70 = tpu.matmul %67, %69, %cst_80 {dimension_numbers = #tpu.dot_dimension_numbers<[1], [0], [0], [1], [0, 0, 1, 1], [], []>} : vector<256x128xbf16>, vector<128x128xbf16>, vector<256x128xf32> -> vector<256x128xf32>
    %71 = arith.addf %63, %70 : vector<256x128xf32>
    %c1_81 = arith.constant 1 : index
    %c2_82 = arith.constant 2 : index
    %c0_83 = arith.constant 0 : index
    %c0_84 = arith.constant 0 : index
    %72 = vector.load %arg7[%c1_81, %c2_82, %c0_83, %c0_84] : memref<3x18x16x128xf32, #tpu.memory_space<vmem>>, vector<1x16x16x128xf32>
    %73 = vector.shape_cast %72 : vector<1x16x16x128xf32> to vector<16x16x128xf32>
    %74 = vector.shape_cast %73 : vector<16x16x128xf32> to vector<256x128xf32>
    %75 = arith.truncf %74 : vector<256x128xf32> to vector<256x128xbf16>
    %c2_85 = arith.constant 2 : index
    %c1_86 = arith.constant 1 : index
    %c0_87 = arith.constant 0 : index
    %c0_88 = arith.constant 0 : index
    %76 = vector.load %arg2[%c2_85, %c1_86, %c0_87, %c0_88] : memref<3x3x128x128xbf16, #tpu.memory_space<vmem>>, vector<1x1x128x128xbf16>
    %77 = vector.shape_cast %76 : vector<1x1x128x128xbf16> to vector<128x128xbf16>
    %cst_89 = arith.constant dense<0.000000e+00> : vector<256x128xf32>
    %78 = tpu.matmul %75, %77, %cst_89 {dimension_numbers = #tpu.dot_dimension_numbers<[1], [0], [0], [1], [0, 0, 1, 1], [], []>} : vector<256x128xbf16>, vector<128x128xbf16>, vector<256x128xf32> -> vector<256x128xf32>
    %79 = arith.addf %71, %78 : vector<256x128xf32>
    %c2_90 = arith.constant 2 : index
    %c2_91 = arith.constant 2 : index
    %c0_92 = arith.constant 0 : index
    %c0_93 = arith.constant 0 : index
    %80 = vector.load %arg7[%c2_90, %c2_91, %c0_92, %c0_93] : memref<3x18x16x128xf32, #tpu.memory_space<vmem>>, vector<1x16x16x128xf32>
    %81 = vector.shape_cast %80 : vector<1x16x16x128xf32> to vector<16x16x128xf32>
    %82 = vector.shape_cast %81 : vector<16x16x128xf32> to vector<256x128xf32>
    %83 = arith.truncf %82 : vector<256x128xf32> to vector<256x128xbf16>
    %c2_94 = arith.constant 2 : index
    %c2_95 = arith.constant 2 : index
    %c0_96 = arith.constant 0 : index
    %c0_97 = arith.constant 0 : index
    %84 = vector.load %arg2[%c2_94, %c2_95, %c0_96, %c0_97] : memref<3x3x128x128xbf16, #tpu.memory_space<vmem>>, vector<1x1x128x128xbf16>
    %85 = vector.shape_cast %84 : vector<1x1x128x128xbf16> to vector<128x128xbf16>
    %cst_98 = arith.constant dense<0.000000e+00> : vector<256x128xf32>
    %86 = tpu.matmul %83, %85, %cst_98 {dimension_numbers = #tpu.dot_dimension_numbers<[1], [0], [0], [1], [0, 0, 1, 1], [], []>} : vector<256x128xbf16>, vector<128x128xbf16>, vector<256x128xf32> -> vector<256x128xf32>
    %87 = arith.addf %79, %86 : vector<256x128xf32>
    %c0_99 = arith.constant 0 : index
    %c0_100 = arith.constant 0 : index
    %88 = vector.load %arg3[%c0_99, %c0_100] : memref<1x128xf32, #tpu.memory_space<vmem>>, vector<1x128xf32>
    %89 = vector.broadcast %88 : vector<1x128xf32> to vector<256x128xf32>
    %90 = arith.addf %87, %89 : vector<256x128xf32>
    %cst_101 = arith.constant 0.000000e+00 : f32
    %91 = vector.broadcast %cst_101 : f32 to vector<256x128xf32>
    %92 = arith.maximumf %90, %91 : vector<256x128xf32>
    %cst_102 = arith.constant dense<0.000000e+00> : vector<128xf32>
    %93 = vector.multi_reduction <add>, %92, %cst_102 [0] : vector<256x128xf32> to vector<128xf32>
    %94 = vector.shape_cast %93 : vector<128xf32> to vector<1x128xf32>
    %cst_103 = arith.constant 2.560000e+02 : f32
    %95 = vector.broadcast %cst_103 : f32 to vector<1x128xf32>
    %96 = arith.divf %94, %95 : vector<1x128xf32>
    %c0_104 = arith.constant 0 : index
    %c0_105 = arith.constant 0 : index
    %97 = vector.load %arg4[%c0_104, %c0_105] : memref<128x128xf32, #tpu.memory_space<vmem>>, vector<128x128xf32>
    %cst_106 = arith.constant dense<0.000000e+00> : vector<1x128xf32>
    %98 = tpu.matmul %96, %97, %cst_106 {dimension_numbers = #tpu.dot_dimension_numbers<[1], [0], [0], [1], [0, 0, 1, 1], [], []>} : vector<1x128xf32>, vector<128x128xf32>, vector<1x128xf32> -> vector<1x128xf32>
    %c0_107 = arith.constant 0 : index
    %c0_108 = arith.constant 0 : index
    %99 = vector.load %arg5[%c0_107, %c0_108] : memref<1x128xf32, #tpu.memory_space<vmem>>, vector<1x128xf32>
    %100 = arith.addf %98, %99 : vector<1x128xf32>
    %cst_109 = arith.constant 0.000000e+00 : f32
    %101 = vector.broadcast %cst_109 : f32 to vector<1x128xf32>
    %102 = arith.subf %101, %100 : vector<1x128xf32>
    %103 = math.exp %102 : vector<1x128xf32>
    %cst_110 = arith.constant 1.000000e+00 : f32
    %104 = vector.broadcast %cst_110 : f32 to vector<1x128xf32>
    %105 = arith.addf %104, %103 : vector<1x128xf32>
    %106 = tpu.reciprocal %105 {approx = true} : vector<1x128xf32> -> vector<1x128xf32>
    %107 = vector.broadcast %106 : vector<1x128xf32> to vector<256x128xf32>
    %108 = arith.mulf %92, %107 : vector<256x128xf32>
    %109 = vector.shape_cast %108 : vector<256x128xf32> to vector<1x16x16x128xf32>
    %c0_111 = arith.constant 0 : index
    %c0_112 = arith.constant 0 : index
    %c0_113 = arith.constant 0 : index
    %c0_114 = arith.constant 0 : index
    %110 = vector.load %arg6[%c0_111, %c0_112, %c0_113, %c0_114] : memref<1x16x16x128xf32, #tpu.memory_space<vmem>>, vector<1x16x16x128xf32>
    tpu.vector_store %arg6[%c0_111, %c0_112, %c0_113, %c0_114], %109 {strides = array<i32>} : memref<1x16x16x128xf32, #tpu.memory_space<vmem>>, vector<1x16x16x128xf32>,
    return
  }
  func.func @transform_0(%arg0: i32) -> (i32, i32, i32, i32) {
    %c0_i32 = arith.constant 0 : i32
    %c0_i32_0 = arith.constant 0 : i32
    %c0_i32_1 = arith.constant 0 : i32
    %c0_i32_2 = arith.constant 0 : i32
    return %arg0, %c0_i32, %c0_i32_0, %c0_i32_1 : i32, i32, i32, i32
  }
  func.func @transform_1(%arg0: i32) -> (i32, i32, i32, i32) {
    %c0_i32 = arith.constant 0 : i32
    %c0_i32_0 = arith.constant 0 : i32
    %c0_i32_1 = arith.constant 0 : i32
    %c0_i32_2 = arith.constant 0 : i32
    %c0_i32_3 = arith.constant 0 : i32
    return %c0_i32, %c0_i32_0, %c0_i32_1, %c0_i32_2 : i32, i32, i32, i32
  }
  func.func @transform_2(%arg0: i32) -> (i32, i32) {
    %c0_i32 = arith.constant 0 : i32
    %c0_i32_0 = arith.constant 0 : i32
    %c0_i32_1 = arith.constant 0 : i32
    return %c0_i32, %c0_i32_0 : i32, i32
  }
  func.func @transform_3(%arg0: i32) -> (i32, i32) {
    %c0_i32 = arith.constant 0 : i32
    %c0_i32_0 = arith.constant 0 : i32
    %c0_i32_1 = arith.constant 0 : i32
    return %c0_i32, %c0_i32_0 : i32, i32
  }
  func.func @transform_4(%arg0: i32) -> (i32, i32) {
    %c0_i32 = arith.constant 0 : i32
    %c0_i32_0 = arith.constant 0 : i32
    %c0_i32_1 = arith.constant 0 : i32
    return %c0_i32, %c0_i32_0 : i32, i32
  }
  func.func @transform_5(%arg0: i32) -> (i32, i32, i32, i32) {
    %c0_i32 = arith.constant 0 : i32
    %c0_i32_0 = arith.constant 0 : i32
    %c0_i32_1 = arith.constant 0 : i32
    %c0_i32_2 = arith.constant 0 : i32
    return %arg0, %c0_i32, %c0_i32_0, %c0_i32_1 : i32, i32, i32, i32
  }
}

</mosaic_0001>

<bundles_post_ra>
// kernel: psp_forward.2
= control target key start
LH: loop header
LB: loop body
LE: loop exit
PB: predicated region body
PF: predicated region fallthrough
CT: control target
= control target key end

     0   :  { %s839_s12 = smov 0   ;;  %s973_s0 = inlined_call_operand.vmem [shape: bf16[512,128], index: 0, kind: input, shape index: {}]   ;;  %s974_s1 = inlined_call_operand.vmem [shape: bf16[128,128], index: 1, kind: input, shape index: {}]   ;;  %s975_s2 = inlined_call_operand.vmem [shape: f32[1,128], index: 2, kind: input, shape index: {}]   ;;  %s976_s3 = inlined_call_operand.vmem [shape: f32[512,128], index: 3, kind: output, shape index: {}]  }
   0x1 LB: > { %s655_s13 = sadd.s32 4294967295, %s817_s12   ;;  %p659_p0 = scmp.ge.s32.totalorder %s817_s12, 1  ;;  %s817_s12 = sphi %s839_s12, %s13_s12  }
   0x2   : > { %p138_p1 = scmp.lt.s32.totalorder %s817_s12, 3 }
   0x4   : > { %p139_p2 = pnand %p659_p0, %p138_p1 }
   0x5   : > { %v787_v0 = vld [vmem:[%s974_s1] sm:$0xff] (!%p139_p2)   ;;  %s660_s16 = sshll.u32 (!%p139_p2), %s655_s13, 5  ;;  %v788_v1 = vld [vmem:[%s974_s1 + $0x8] sm:$0xff] (!%p139_p2)   ;;  %v789_v2 = vld [vmem:[%s974_s1 + $0x10] sm:$0xff] (!%p139_p2)  }
   0x6   : > { %142 = sbr.rel (%p139_p2) target bundleno = 282 (0x11a), region = 32  ;;  %p163_p3 = scmp.lt.s32.totalorder (!%p139_p2), %s660_s16, 63  ;;  %715 = vmatprep.subr.bf16.mxu0 (!%p139_p2), %v787_v0  ;;  %763 = vmatprep.subr.bf16.mxu1 (!%p139_p2), %v787_v0  ;;  %v790_v3 = vld [vmem:[%s974_s1 + $0x18] sm:$0xff] (!%p139_p2)   ;;  %v791_v6 = vld [vmem:[%s974_s1 + $0x20] sm:$0xff] (!%p139_p2)   ;;  %v792_v7 = vld [vmem:[%s974_s1 + $0x28] sm:$0xff] (!%p139_p2)  }
   0x7   : > { %716 = vmatpush3.bf16.msra.mxu0 (!%p139_p2), %v787_v0  ;;  %771 = vmatpush3.bf16.msra.mxu1 (!%p139_p2), %v787_v0  ;;  %v793_v8 = vld [vmem:[%s974_s1 + $0x30] sm:$0xff] (!%p139_p2)   ;;  %v794_v9 = vld [vmem:[%s974_s1 + $0x38] sm:$0xff] (!%p139_p2)   ;;  %v898_v24 = vld [vmem:[%s975_s2] ss:$0 sm:$0xff] (!%p139_p2) }
   0x8   : > { %717 = vmatprep.subr.bf16.mxu0 (!%p139_p2), %v788_v1  ;;  %764 = vmatprep.subr.bf16.mxu1 (!%p139_p2), %v788_v1 }
   0xb   : > { %718 = vmatpush3.bf16.msra.mxu0 (!%p139_p2), %v788_v1  ;;  %772 = vmatpush3.bf16.msra.mxu1 (!%p139_p2), %v788_v1 }
   0xc   : > { %719 = vmatprep.subr.bf16.mxu0 (!%p139_p2), %v789_v2  ;;  %765 = vmatprep.subr.bf16.mxu1 (!%p139_p2), %v789_v2 }
   0xd   : > { %s978_s16 = smov (!%p163_p3, %s660_s16), 63 }
   0xe   : > { %s661_s21 = sshll.u32 %s978_s16, 2  ;;  %s663_s10 = sshll.u32 %s978_s16, 3 }
   0xf   : > { %s862_s24 = scalar_lea.vmem %s973_s0, %s661_s21  ;;  %720 = vmatpush3.bf16.msra.mxu0 %v789_v2  ;;  %773 = vmatpush3.bf16.msra.mxu1 %v789_v2  ;;  %s906_s14 = scalar_lea.vmem %s976_s3, %s663_s10 }
  0x10   : > { %v795_v4 = vld [vmem:[%s862_s24] sm:$0xff]   ;;  %721 = vmatprep.subr.bf16.mxu0 %v790_v3  ;;  %766 = vmatprep.subr.bf16.mxu1 %v790_v3  ;;  %v797_v10 = vld [vmem:[%s862_s24 + $0x8] sm:$0xff]   ;;  %v799_v12 = vld [vmem:[%s862_s24 + $0x10] sm:$0xff]  }
  0x11   : > { %v796_v5 = vld [vmem:[%s862_s24 + $0x40] sm:$0xff]   ;;  %731 = vmatprep.mubr.bf16.mxu0 %v795_v4  ;;  %v798_v11 = vld [vmem:[%s862_s24 + $0x48] sm:$0xff]   ;;  %v800_v13 = vld [vmem:[%s862_s24 + $0x50] sm:$0xff]  }
  0x12   : > { %747 = vmatprep.mubr.bf16.mxu1 %v796_v5  ;;  %v801_v14 = vld [vmem:[%s862_s24 + $0x18] sm:$0xff]   ;;  %v803_v16 = vld [vmem:[%s862_s24 + $0x20] sm:$0xff]   ;;  %v805_v18 = vld [vmem:[%s862_s24 + $0x28] sm:$0xff]  }
  0x13   : > { %722 = vmatpush3.bf16.msra.mxu0 %v790_v3  ;;  %774 = vmatpush3.bf16.msra.mxu1 %v790_v3  ;;  %v802_v15 = vld [vmem:[%s862_s24 + $0x58] sm:$0xff]   ;;  %v804_v17 = vld [vmem:[%s862_s24 + $0x60] sm:$0xff]   ;;  %v806_v19 = vld [vmem:[%s862_s24 + $0x68] sm:$0xff]  }
  0x14   : > { %723 = vmatprep.subr.bf16.mxu0 %v791_v6  ;;  %767 = vmatprep.subr.bf16.mxu1 %v791_v6  ;;  %v807_v20 = vld [vmem:[%s862_s24 + $0x30] sm:$0xff]   ;;  %v809_v22 = vld [vmem:[%s862_s24 + $0x38] sm:$0xff]  }
  0x15   : > { %v808_v21 = vld [vmem:[%s862_s24 + $0x70] sm:$0xff]   ;;  %v810_v23 = vld [vmem:[%s862_s24 + $0x78] sm:$0xff]  }
  0x17   : > { %724 = vmatpush3.bf16.msra.mxu0 %v791_v6  ;;  %775 = vmatpush3.bf16.msra.mxu1 %v791_v6 }
  0x18   : > { %725 = vmatprep.subr.bf16.mxu0 %v792_v7  ;;  %768 = vmatprep.subr.bf16.mxu1 %v792_v7 }
  0x1b   : > { %726 = vmatpush3.bf16.msra.mxu0 %v792_v7  ;;  %776 = vmatpush3.bf16.msra.mxu1 %v792_v7 }
  0x1c   : > { %727 = vmatprep.subr.bf16.mxu0 %v793_v8  ;;  %769 = vmatprep.subr.bf16.mxu1 %v793_v8 }
  0x1f   : > { %728 = vmatpush3.bf16.msra.mxu0 %v793_v8  ;;  %777 = vmatpush3.bf16.msra.mxu1 %v793_v8 }
  0x20   : > { %729 = vmatprep.subr.bf16.mxu0 %v794_v9  ;;  %770 = vmatprep.subr.bf16.mxu1 %v794_v9 }
  0x23   : > { %730 = vmatpush3.bf16.msra.mxu0 %v794_v9  ;;  %778 = vmatpush3.bf16.msra.mxu1 %v794_v9 }
  0x26   : > { %732 = vmatmul.mubr.bf16.vlgmr.msra.gmra.mrb[0].mxu0 %v797_v10  ;;  %748 = vmatmul.mubr.bf16.vlgmr.msra.gmra.mrb[0].mxu1 %v798_v11 }
  0x27   : > { %735 = vmatprep.mubr.bf16.mxu0 %v799_v12  ;;  %751 = vmatprep.mubr.bf16.mxu1 %v800_v13 }
  0x2e   : > { %736 = vmatmul.mubr.bf16.gmra.mrb[4].mxu0 %v801_v14  ;;  %752 = vmatmul.mubr.bf16.gmra.mrb[4].mxu1 %v802_v15 }
  0x2f   : > { %739 = vmatprep.mubr.bf16.mxu0 %v803_v16  ;;  %755 = vmatprep.mubr.bf16.mxu1 %v804_v17 }
  0x36   : > { %740 = vmatmul.mubr.bf16.gmra.mrb[8].mxu0 %v805_v18  ;;  %756 = vmatmul.mubr.bf16.gmra.mrb[8].mxu1 %v806_v19 }
  0x37   : > { %743 = vmatprep.mubr.bf16.mxu0 %v807_v20  ;;  %759 = vmatprep.mubr.bf16.mxu1 %v808_v21 }
  0x3e   : > { %744 = vmatmul.mubr.bf16.gmra.mrb[12].mxu0 %v809_v22  ;;  %760 = vmatmul.mubr.bf16.gmra.mrb[12].mxu1 %v810_v23 }
  0xf9   : > { %v733_v25 = vpop.f32.mrb[0].mxu0  ;;  %v749_v26 = vpop.f32.mrb[0].mxu1 }
  0xfa   : > { %v417_v27 = vadd.f32 %v733_v25, %v898_v24  ;;  %v481_v28 = vadd.f32 %v749_v26, %v898_v24  ;;  %v408_v29 = vpop.f32.mrb[1].mxu0  ;;  %v472_v30 = vpop.f32.mrb[1].mxu1 }
  0xfb   : > { %v409_v31 = vadd.f32 %v898_v24, %v408_v29  ;;  %v473_v32 = vadd.f32 %v898_v24, %v472_v30  ;;  %v734_v33 = vpop.f32.mrb[2].mxu0  ;;  %v750_v34 = vpop.f32.mrb[2].mxu1 }
  0xfc   : > { %v537_v35 = vmax.f32 %v417_v27, 0.0  ;;  %v553_v36 = vmax.f32 %v481_v28, 0.0  ;;  %v420_v37 = vadd.f32 %v734_v33, %v898_v24  ;;  %v484_v38 = vadd.f32 %v750_v34, %v898_v24  ;;  %v411_v39 = vpop.f32.mrb[3].mxu0  ;;  %v475_v40 = vpop.f32.mrb[3].mxu1 }
  0xfd   : > { %v535_v41 = vmax.f32 %v409_v31, 0.0  ;;  %v551_v42 = vmax.f32 %v473_v32, 0.0  ;;  %v412_v43 = vadd.f32 %v898_v24, %v411_v39  ;;  %v476_v44 = vadd.f32 %v898_v24, %v475_v40 }
  0xfe   : > { %569 = vst [vmem:[%s906_s14 + $0x10] sm:$0xff] %v537_v35  ;;  %585 = vst [vmem:[%s906_s14 + $0x90] sm:$0xff] %v553_v36  ;;  %v538_v45 = vmax.f32 %v420_v37, 0.0  ;;  %v554_v46 = vmax.f32 %v484_v38, 0.0 }
  0xff   : > { %567 = vst [vmem:[%s906_s14] sm:$0xff] %v535_v41  ;;  %583 = vst [vmem:[%s906_s14 + $0x80] sm:$0xff] %v551_v42  ;;  %v536_v47 = vmax.f32 %v412_v43, 0.0  ;;  %v552_v48 = vmax.f32 %v476_v44, 0.0 }
 0x100   : > { %570 = vst [vmem:[%s906_s14 + $0x18] sm:$0xff] %v538_v45  ;;  %586 = vst [vmem:[%s906_s14 + $0x98] sm:$0xff] %v554_v46 }
 0x101   : > { %568 = vst [vmem:[%s906_s14 + $0x8] sm:$0xff] %v536_v47  ;;  %584 = vst [vmem:[%s906_s14 + $0x88] sm:$0xff] %v552_v48  ;;  %v737_v49 = vpop.f32.mrb[4].mxu0  ;;  %v753_v50 = vpop.f32.mrb[4].mxu1 }
 0x102   : > { %v433_v51 = vadd.f32 %v737_v49, %v898_v24  ;;  %v497_v52 = vadd.f32 %v753_v50, %v898_v24  ;;  %v424_v53 = vpop.f32.mrb[5].mxu0  ;;  %v488_v54 = vpop.f32.mrb[5].mxu1 }
 0x103   : > { %v425_v55 = vadd.f32 %v898_v24, %v424_v53  ;;  %v489_v56 = vadd.f32 %v898_v24, %v488_v54  ;;  %v738_v57 = vpop.f32.mrb[6].mxu0  ;;  %v754_v58 = vpop.f32.mrb[6].mxu1 }
 0x104   : > { %v541_v59 = vmax.f32 %v433_v51, 0.0  ;;  %v557_v60 = vmax.f32 %v497_v52, 0.0  ;;  %v436_v61 = vadd.f32 %v738_v57, %v898_v24  ;;  %v500_v62 = vadd.f32 %v754_v58, %v898_v24  ;;  %v427_v63 = vpop.f32.mrb[7].mxu0  ;;  %v491_v0 = vpop.f32.mrb[7].mxu1 }
 0x105   : > { %v539_v1 = vmax.f32 %v425_v55, 0.0  ;;  %v555_v2 = vmax.f32 %v489_v56, 0.0  ;;  %v428_v3 = vadd.f32 %v898_v24, %v427_v63  ;;  %v492_v4 = vadd.f32 %v898_v24, %v491_v0 }
 0x106   : > { %573 = vst [vmem:[%s906_s14 + $0x30] sm:$0xff] %v541_v59  ;;  %589 = vst [vmem:[%s906_s14 + $0xb0] sm:$0xff] %v557_v60  ;;  %v542_v5 = vmax.f32 %v436_v61, 0.0  ;;  %v558_v6 = vmax.f32 %v500_v62, 0.0 }
 0x107   : > { %571 = vst [vmem:[%s906_s14 + $0x20] sm:$0xff] %v539_v1  ;;  %587 = vst [vmem:[%s906_s14 + $0xa0] sm:$0xff] %v555_v2  ;;  %v540_v7 = vmax.f32 %v428_v3, 0.0  ;;  %v556_v8 = vmax.f32 %v492_v4, 0.0 }
 0x108   : > { %574 = vst [vmem:[%s906_s14 + $0x38] sm:$0xff] %v542_v5  ;;  %590 = vst [vmem:[%s906_s14 + $0xb8] sm:$0xff] %v558_v6 }
 0x109   : > { %572 = vst [vmem:[%s906_s14 + $0x28] sm:$0xff] %v540_v7  ;;  %588 = vst [vmem:[%s906_s14 + $0xa8] sm:$0xff] %v556_v8  ;;  %v741_v9 = vpop.f32.mrb[8].mxu0  ;;  %v757_v10 = vpop.f32.mrb[8].mxu1 }
 0x10a   : > { %v449_v11 = vadd.f32 %v741_v9, %v898_v24  ;;  %v513_v12 = vadd.f32 %v757_v10, %v898_v24  ;;  %v440_v13 = vpop.f32.mrb[9].mxu0  ;;  %v504_v14 = vpop.f32.mrb[9].mxu1 }
 0x10b   : > { %v441_v15 = vadd.f32 %v898_v24, %v440_v13  ;;  %v505_v16 = vadd.f32 %v898_v24, %v504_v14  ;;  %v742_v17 = vpop.f32.mrb[10].mxu0  ;;  %v758_v18 = vpop.f32.mrb[10].mxu1 }
 0x10c   : > { %v545_v19 = vmax.f32 %v449_v11, 0.0  ;;  %v561_v20 = vmax.f32 %v513_v12, 0.0  ;;  %v452_v21 = vadd.f32 %v742_v17, %v898_v24  ;;  %v516_v22 = vadd.f32 %v758_v18, %v898_v24  ;;  %v443_v23 = vpop.f32.mrb[11].mxu0  ;;  %v507_v25 = vpop.f32.mrb[11].mxu1 }
 0x10d   : > { %v543_v26 = vmax.f32 %v441_v15, 0.0  ;;  %v559_v27 = vmax.f32 %v505_v16, 0.0  ;;  %v444_v28 = vadd.f32 %v898_v24, %v443_v23  ;;  %v508_v29 = vadd.f32 %v898_v24, %v507_v25 }
 0x10e   : > { %577 = vst [vmem:[%s906_s14 + $0x50] sm:$0xff] %v545_v19  ;;  %593 = vst [vmem:[%s906_s14 + $0xd0] sm:$0xff] %v561_v20  ;;  %v546_v30 = vmax.f32 %v452_v21, 0.0  ;;  %v562_v31 = vmax.f32 %v516_v22, 0.0 }
 0x10f   : > { %575 = vst [vmem:[%s906_s14 + $0x40] sm:$0xff] %v543_v26  ;;  %591 = vst [vmem:[%s906_s14 + $0xc0] sm:$0xff] %v559_v27  ;;  %v544_v32 = vmax.f32 %v444_v28, 0.0  ;;  %v560_v33 = vmax.f32 %v508_v29, 0.0 }
 0x110   : > { %578 = vst [vmem:[%s906_s14 + $0x58] sm:$0xff] %v546_v30  ;;  %594 = vst [vmem:[%s906_s14 + $0xd8] sm:$0xff] %v562_v31 }
 0x111   : > { %576 = vst [vmem:[%s906_s14 + $0x48] sm:$0xff] %v544_v32  ;;  %592 = vst [vmem:[%s906_s14 + $0xc8] sm:$0xff] %v560_v33  ;;  %v745_v34 = vpop.f32.mrb[12].mxu0  ;;  %v761_v35 = vpop.f32.mrb[12].mxu1 }
 0x112   : > { %v465_v36 = vadd.f32 %v745_v34, %v898_v24  ;;  %v529_v37 = vadd.f32 %v761_v35, %v898_v24  ;;  %v456_v38 = vpop.f32.mrb[13].mxu0  ;;  %v520_v39 = vpop.f32.mrb[13].mxu1 }
 0x113   : > { %v457_v40 = vadd.f32 %v898_v24, %v456_v38  ;;  %v521_v41 = vadd.f32 %v898_v24, %v520_v39  ;;  %v746_v42 = vpop.f32.mrb[14].mxu0  ;;  %v762_v43 = vpop.f32.mrb[14].mxu1 }
 0x114   : > { %v549_v44 = vmax.f32 %v465_v36, 0.0  ;;  %v565_v45 = vmax.f32 %v529_v37, 0.0  ;;  %v468_v46 = vadd.f32 %v746_v42, %v898_v24  ;;  %v532_v47 = vadd.f32 %v762_v43, %v898_v24  ;;  %v459_v48 = vpop.f32.mrb[15].mxu0  ;;  %v523_v49 = vpop.f32.mrb[15].mxu1 }
 0x115   : > { %v547_v50 = vmax.f32 %v457_v40, 0.0  ;;  %v563_v51 = vmax.f32 %v521_v41, 0.0  ;;  %v460_v52 = vadd.f32 %v898_v24, %v459_v48  ;;  %v524_v53 = vadd.f32 %v898_v24, %v523_v49 }
 0x116   : > { %581 = vst [vmem:[%s906_s14 + $0x70] sm:$0xff] %v549_v44  ;;  %597 = vst [vmem:[%s906_s14 + $0xf0] sm:$0xff] %v565_v45  ;;  %v550_v54 = vmax.f32 %v468_v46, 0.0  ;;  %v566_v55 = vmax.f32 %v532_v47, 0.0 }
 0x117   : > { %579 = vst [vmem:[%s906_s14 + $0x60] sm:$0xff] %v547_v50  ;;  %595 = vst [vmem:[%s906_s14 + $0xe0] sm:$0xff] %v563_v51  ;;  %v548_v56 = vmax.f32 %v460_v52, 0.0  ;;  %v564_v57 = vmax.f32 %v524_v53, 0.0 }
 0x118   : > { %582 = vst [vmem:[%s906_s14 + $0x78] sm:$0xff] %v550_v54  ;;  %598 = vst [vmem:[%s906_s14 + $0xf8] sm:$0xff] %v566_v55 }
 0x119   : > { %580 = vst [vmem:[%s906_s14 + $0x68] sm:$0xff] %v548_v56  ;;  %596 = vst [vmem:[%s906_s14 + $0xe8] sm:$0xff] %v564_v57 }
 0x11a PF: > { %s13_s12 = sadd.s32 1, %s817_s12  }
 0x11b   : > { %p10_p4 = scmp.ge.s32.totalorder %s13_s12, 4  }
 0x11d   :  { %12 = sbr.rel (!%p10_p4) target bundleno = 1 (0x1), region = 62 }

// kernel: psp_forward.3
= control target key start
LH: loop header
LB: loop body
LE: loop exit
PB: predicated region body
PF: predicated region fallthrough
CT: control target
= control target key end

     0   :  { %s4831_s18 = smov 0   ;;  %s5948_s0 = inlined_call_operand.vmem [shape: f32[2,16,16,128], index: 0, kind: input, shape index: {}, may-alias: {0,5}]   ;;  %s5949_s1 = inlined_call_operand.vmem [shape: bf16[3,3,128,128], index: 1, kind: input, shape index: {}]   ;;  %s5950_s2 = inlined_call_operand.vmem [shape: f32[1,128], index: 2, kind: input, shape index: {}]   ;;  %s5951_s3 = inlined_call_operand.vmem [shape: f32[128,128], index: 3, kind: input, shape index: {}]   ;;  %s5952_s4 = inlined_call_operand.vmem [shape: f32[1,128], index: 4, kind: input, shape index: {}]   ;;  %s5953_s5 = inlined_call_operand.vmem [shape: f32[2,16,16,128], index: 5, kind: output, shape index: {}, may-alias: {0,5}]  }
   0x1 LB: > { %s3484_s19 = sadd.s32 4294967295, %s4796_s18   ;;  %p3488_p0 = scmp.ge.s32.totalorder %s4796_s18, 1  ;;  %s4796_s18 = sphi %s4831_s18, %s15_s18  }
   0x2   : > { %p187_p1 = scmp.lt.s32.totalorder %s4796_s18, 3 }
   0x4   : > { %p188_p2 = pnand %p3488_p0, %p187_p1 }
   0x5   : > { %v4842_v0 = vld [vmem:[%s5949_s1 + $0x40] sm:$0xff] (!%p188_p2)   ;;  %v4798_v2 = vmov (!%p188_p2), 0.0   ;;  %v4707_v3 = vld [vmem:[%s5949_s1 + $0x48] sm:$0xff] (!%p188_p2)   ;;  %p215_p3 = scmp.lt.s32.totalorder (!%p188_p2), %s3484_s19, 1  ;;  %v4709_v5 = vld [vmem:[%s5949_s1 + $0x50] sm:$0xff] (!%p188_p2)   ;;  %v4799_v7 = vmov (!%p188_p2), 0.0|0.0  }
   0x6   : > { %191 = sbr.rel (%p188_p2) target bundleno = 823 (0x337), region = 40  ;;  %v4847_v1 = vld [vmem:[%s5949_s1 + $0x100] sm:$0xff] (!%p188_p2)   ;;  %294 = vst [vmem:[#allocation2 + $0x120] sm:$0xff] (!%p188_p2), %v4798_v2  ;;  %260 = vst [vmem:[#allocation2 + $0x10] sm:$0xff] (!%p188_p2), %v4798_v2  ;;  %3931 = vmatprep.subr.bf16.mxu1 (!%p188_p2), %v4842_v0  ;;  %v4708_v4 = vld [vmem:[%s5949_s1 + $0x108] sm:$0xff] (!%p188_p2)   ;;  %3947 = vmatprep.mubr.bf16.mxu1 (!%p188_p2), %v4799_v7  ;;  %vm4800_vm0 = vmmov (!%p188_p2), 0  }
   0x7   : > { %261 = vst [vmem:[#allocation2 + $0x18] sm:$0xff] (!%p188_p2), %v4798_v2  ;;  %262 = vst [vmem:[#allocation2 + $0x20] sm:$0xff] (!%p188_p2), %v4798_v2  ;;  %4123 = vmatprep.subr.bf16.mxu0 (!%p188_p2), %v4847_v1  ;;  %3932 = vmatpush3.bf16.msra.mxu1 (!%p188_p2), %v4842_v0  ;;  %v4710_v6 = vld [vmem:[%s5949_s1 + $0x110] sm:$0xff] (!%p188_p2)   ;;  %v4711_v8 = vld [vmem:[%s5949_s1 + $0x58] sm:$0xff] (!%p188_p2)  }
   0x8   : > { %263 = vst [vmem:[#allocation2 + $0x28] sm:$0xff] (!%p188_p2), %v4798_v2  ;;  %264 = vst [vmem:[#allocation2 + $0x30] sm:$0xff] (!%p188_p2), %v4798_v2  ;;  %4124 = vmatpush3.bf16.msra.mxu0 (!%p188_p2), %v4847_v1  ;;  %3933 = vmatprep.subr.bf16.mxu1 (!%p188_p2), %v4707_v3  ;;  %v4712_v9 = vld [vmem:[%s5949_s1 + $0x118] sm:$0xff] (!%p188_p2)   ;;  %v4713_v10 = vld [vmem:[%s5949_s1 + $0x60] sm:$0xff] (!%p188_p2)  }
   0x9   : > { %265 = vst [vmem:[#allocation2 + $0x38] sm:$0xff] (!%p188_p2), %v4798_v2  ;;  %266 = vst [vmem:[#allocation2 + $0x40] sm:$0xff] (!%p188_p2), %v4798_v2  ;;  %4125 = vmatprep.subr.bf16.mxu0 (!%p188_p2), %v4708_v4  ;;  %v4714_v11 = vld [vmem:[%s5949_s1 + $0x120] sm:$0xff] (!%p188_p2)   ;;  %v4715_v12 = vld [vmem:[%s5949_s1 + $0x68] sm:$0xff] (!%p188_p2)  }
   0xa   : > { %267 = vst [vmem:[#allocation2 + $0x48] sm:$0xff] (!%p188_p2), %v4798_v2  ;;  %268 = vst [vmem:[#allocation2 + $0x50] sm:$0xff] (!%p188_p2), %v4798_v2  ;;  %v4716_v15 = vld [vmem:[%s5949_s1 + $0x128] sm:$0xff] (!%p188_p2)   ;;  %v4717_v19 = vld [vmem:[%s5949_s1 + $0x70] sm:$0xff] (!%p188_p2)  }
   0xb   : > { %269 = vst [vmem:[#allocation2 + $0x58] sm:$0xff] (!%p188_p2), %v4798_v2  ;;  %270 = vst [vmem:[#allocation2 + $0x60] sm:$0xff] (!%p188_p2), %v4798_v2  ;;  %3934 = vmatpush3.bf16.msra.mxu1 (!%p188_p2), %v4707_v3  ;;  %v4718_v22 = vld [vmem:[%s5949_s1 + $0x130] sm:$0xff] (!%p188_p2)   ;;  %v4719_v25 = vld [vmem:[%s5949_s1 + $0x78] sm:$0xff] (!%p188_p2)  }
   0xc   : > { %271 = vst [vmem:[#allocation2 + $0x68] sm:$0xff] (!%p188_p2), %v4798_v2  ;;  %272 = vst [vmem:[#allocation2 + $0x70] sm:$0xff] (!%p188_p2), %v4798_v2  ;;  %4126 = vmatpush3.bf16.msra.mxu0 (!%p188_p2), %v4708_v4  ;;  %3935 = vmatprep.subr.bf16.mxu1 (!%p188_p2), %v4709_v5  ;;  %v4720_v26 = vld [vmem:[%s5949_s1 + $0x138] sm:$0xff] (!%p188_p2)   ;;  %v4721_v31 = vld [vmem:[%s5949_s1] sm:$0xff] (!%p188_p2)  }
   0xd   : > { %273 = vst [vmem:[#allocation2 + $0x78] sm:$0xff] %v4798_v2  ;;  %274 = vst [vmem:[#allocation2 + $0x80] sm:$0xff] %v4798_v2  ;;  %s5987_s19 = smov (!%p215_p3, %s3484_s19), 1  ;;  %4127 = vmatprep.subr.bf16.mxu0 %v4710_v6  ;;  %v4722_v32 = vld [vmem:[%s5949_s1 + $0x140] sm:$0xff]   ;;  %v4723_v38 = vld [vmem:[%s5949_s1 + $0x148] sm:$0xff]  }
   0xe   : > { %275 = vst [vmem:[#allocation2 + $0x88] sm:$0xff] %v4798_v2  ;;  %276 = vst [vmem:[#allocation2 + $0x90] sm:$0xff] %v4798_v2  ;;  %s3696_s11 = sshll.u32 %s5987_s19, 8  ;;  %v4724_v40 = vld [vmem:[%s5949_s1 + $0x8] sm:$0xff]   ;;  %v4727_v43 = vld [vmem:[%s5949_s1 + $0x10] sm:$0xff]  }
   0xf   : > { %277 = vst [vmem:[#allocation2 + $0x98] sm:$0xff] %v4798_v2  ;;  %278 = vst [vmem:[#allocation2 + $0xa0] sm:$0xff] %v4798_v2  ;;  %3936 = vmatpush3.bf16.msra.mxu1 %v4709_v5  ;;  %s4955_s20 = scalar_lea.vmem %s5948_s0, %s3696_s11  ;;  %v4725_v44 = vld [vmem:[%s5949_s1 + $0x150] sm:$0xff]   ;;  %v4726_v51 = vld [vmem:[%s5949_s1 + $0x158] sm:$0xff]   ;;  %s5847_s25 = scalar_lea.vmem %s5953_s5, %s3696_s11 }
  0x10   : > { %279 = vst [vmem:[#allocation2 + $0xa8] sm:$0xff] %v4798_v2  ;;  %280 = vst [vmem:[#allocation2 + $0xb0] sm:$0xff] %v4798_v2  ;;  %4128 = vmatpush3.bf16.msra.mxu0 %v4710_v6  ;;  %3937 = vmatprep.subr.bf16.mxu1 %v4711_v8  ;;  %v226_v13 = vld [vmem:[%s4955_s20] sm:$0xff]  ;;  %v227_v14 = vld [vmem:[%s4955_s20 + $0x8] sm:$0xff] }
  0x11   : > { %281 = vst [vmem:[#allocation2 + $0xb8] sm:$0xff] %v4798_v2  ;;  %282 = vst [vmem:[#allocation2 + $0xc0] sm:$0xff] %v4798_v2  ;;  %4129 = vmatprep.subr.bf16.mxu0 %v4712_v9  ;;  %v4965_v16 = vpack.c.bf16 %v227_v14, %v226_v13  ;;  %v4968_v17 = vld [vmem:[%s4955_s20 + $0x10] sm:$0xff]  ;;  %v4971_v18 = vld [vmem:[%s4955_s20 + $0x18] sm:$0xff] }
  0x12   : > { %283 = vst [vmem:[#allocation2 + $0xc8] sm:$0xff] %v4798_v2  ;;  %284 = vst [vmem:[#allocation2 + $0xd0] sm:$0xff] %v4798_v2  ;;  %v4984_v20 = vld [vmem:[%s4955_s20 + $0x20] sm:$0xff]  ;;  %v4987_v21 = vld [vmem:[%s4955_s20 + $0x28] sm:$0xff]  ;;  %v1659_v36 = vpack.c.bf16 %v4971_v18, %v4968_v17 }
  0x13   : > { %285 = vst [vmem:[#allocation2 + $0xd8] sm:$0xff] %v4798_v2  ;;  %286 = vst [vmem:[#allocation2 + $0xe0] sm:$0xff] %v4798_v2  ;;  %3938 = vmatpush3.bf16.msra.mxu1 %v4711_v8  ;;  %4139 = vmatprep.mubr.bf16.mxu0 %v4965_v16  ;;  %v4999_v23 = vld [vmem:[%s4955_s20 + $0x30] sm:$0xff]  ;;  %v5002_v24 = vld [vmem:[%s4955_s20 + $0x38] sm:$0xff]  ;;  %v1660_v39 = vpack.c.bf16 %v4987_v21, %v4984_v20 }
  0x14   : > { %287 = vst [vmem:[#allocation2 + $0xe8] sm:$0xff] %v4798_v2  ;;  %288 = vst [vmem:[#allocation2 + $0xf0] sm:$0xff] %v4798_v2  ;;  %4130 = vmatpush3.bf16.msra.mxu0 %v4712_v9  ;;  %3939 = vmatprep.subr.bf16.mxu1 %v4713_v10  ;;  %v5017_v27 = vld [vmem:[%s4955_s20 + $0x40] sm:$0xff]  ;;  %v5020_v28 = vld [vmem:[%s4955_s20 + $0x48] sm:$0xff]  ;;  %v1661_v48 = vpack.c.bf16 %v5002_v24, %v4999_v23 }
  0x15   : > { %289 = vst [vmem:[#allocation2 + $0xf8] sm:$0xff] %v4798_v2  ;;  %290 = vst [vmem:[#allocation2 + $0x100] sm:$0xff] %v4798_v2  ;;  %4131 = vmatprep.subr.bf16.mxu0 %v4714_v11  ;;  %v5029_v29 = vld [vmem:[%s4955_s20 + $0x50] sm:$0xff]  ;;  %v5032_v30 = vld [vmem:[%s4955_s20 + $0x58] sm:$0xff]  ;;  %v1662_v50 = vpack.c.bf16 %v5020_v28, %v5017_v27 }
  0x16   : > { %291 = vst [vmem:[#allocation2 + $0x108] sm:$0xff] %v4798_v2  ;;  %332 = vst [vmem:[#allocation2 + $0x250] sm:$0xff] %v4798_v2  ;;  %v5047_v33 = vld [vmem:[%s4955_s20 + $0x60] sm:$0xff]  ;;  %v5050_v34 = vld [vmem:[%s4955_s20 + $0x68] sm:$0xff]  ;;  %v1663_v60 = vpack.c.bf16 %v5032_v30, %v5029_v29 }
  0x17   : > { %333 = vst [vmem:[#allocation2 + $0x258] sm:$0xff] %v4798_v2  ;;  %334 = vst [vmem:[#allocation2 + $0x260] sm:$0xff] %v4798_v2  ;;  %3940 = vmatpush3.bf16.msra.mxu1 %v4713_v10  ;;  %v5059_v35 = vld [vmem:[%s4955_s20 + $0x70] sm:$0xff]  ;;  %v5064_v37 = vld [vmem:[%s4955_s20 + $0x78] sm:$0xff]  ;;  %v1664_v62 = vpack.c.bf16 %v5050_v34, %v5047_v33 }
  0x18   : > { %335 = vst [vmem:[#allocation2 + $0x268] sm:$0xff] %v4798_v2  ;;  %336 = vst [vmem:[#allocation2 + $0x270] sm:$0xff] %v4798_v2  ;;  %4132 = vmatpush3.bf16.msra.mxu0 %v4714_v11  ;;  %3941 = vmatprep.subr.bf16.mxu1 %v4715_v12  ;;  %v5082_v41 = vld [vmem:[%s4955_s20 + $0x80] sm:$0xff]  ;;  %v5085_v42 = vld [vmem:[%s4955_s20 + $0x88] sm:$0xff]  ;;  %v1665_v8 = vpack.c.bf16 %v5064_v37, %v5059_v35 }
  0x19   : > { %337 = vst [vmem:[#allocation2 + $0x278] sm:$0xff] %v4798_v2  ;;  %338 = vst [vmem:[#allocation2 + $0x280] sm:$0xff] %v4798_v2  ;;  %4133 = vmatprep.subr.bf16.mxu0 %v4716_v15  ;;  %v5100_v45 = vld [vmem:[%s4955_s20 + $0x90] sm:$0xff]  ;;  %v5103_v46 = vld [vmem:[%s4955_s20 + $0x98] sm:$0xff] }
  0x1a   : > { %339 = vst [vmem:[#allocation2 + $0x288] sm:$0xff] %v4798_v2  ;;  %340 = vst [vmem:[#allocation2 + $0x290] sm:$0xff] %v4798_v2  ;;  %v5112_v47 = vld [vmem:[%s4955_s20 + $0xa0] sm:$0xff]  ;;  %v5117_v49 = vld [vmem:[%s4955_s20 + $0xa8] sm:$0xff] }
  0x1b   : > { %341 = vst [vmem:[#allocation2 + $0x298] sm:$0xff] %v4798_v2  ;;  %342 = vst [vmem:[#allocation2 + $0x2a0] sm:$0xff] %v4798_v2  ;;  %3942 = vmatpush3.bf16.msra.mxu1 %v4715_v12  ;;  %v4730_v52 = vld [vmem:[%s5949_s1 + $0x18] sm:$0xff]   ;;  %v5134_v53 = vld [vmem:[%s4955_s20 + $0xb0] sm:$0xff] }
  0x1c   : > { %343 = vst [vmem:[#allocation2 + $0x2a8] sm:$0xff] %v4798_v2  ;;  %344 = vst [vmem:[#allocation2 + $0x2b0] sm:$0xff] %v4798_v2  ;;  %4134 = vmatpush3.bf16.msra.mxu0 %v4716_v15  ;;  %3943 = vmatprep.subr.bf16.mxu1 %v4717_v19  ;;  %v5137_v54 = vld [vmem:[%s4955_s20 + $0xb8] sm:$0xff]  ;;  %v5146_v55 = vld [vmem:[%s4955_s20 + $0xc0] sm:$0xff] }
  0x1d   : > { %345 = vst [vmem:[#allocation2 + $0x2b8] sm:$0xff] %v4798_v2  ;;  %346 = vst [vmem:[#allocation2 + $0x2c0] sm:$0xff] %v4798_v2  ;;  %4135 = vmatprep.subr.bf16.mxu0 %v4718_v22  ;;  %v5149_v56 = vld [vmem:[%s4955_s20 + $0xc8] sm:$0xff]  ;;  %v4728_v57 = vld [vmem:[%s5949_s1 + $0x160] sm:$0xff]  }
  0x1e   : > { %347 = vst [vmem:[#allocation2 + $0x2c8] sm:$0xff] %v4798_v2  ;;  %348 = vst [vmem:[#allocation2 + $0x2d0] sm:$0xff] %v4798_v2  ;;  %v4733_v58 = vld [vmem:[%s5949_s1 + $0x20] sm:$0xff]   ;;  %v5164_v59 = vld [vmem:[%s4955_s20 + $0xd0] sm:$0xff] }
  0x1f   : > { %349 = vst [vmem:[#allocation2 + $0x2d8] sm:$0xff] %v4798_v2  ;;  %350 = vst [vmem:[#allocation2 + $0x2e0] sm:$0xff] %v4798_v2  ;;  %3944 = vmatpush3.bf16.msra.mxu1 %v4717_v19  ;;  %v5169_v61 = vld [vmem:[%s4955_s20 + $0xd8] sm:$0xff]  ;;  %v5180_v63 = vld [vmem:[%s4955_s20 + $0xe0] sm:$0xff] }
  0x20   : > { %351 = vst [vmem:[#allocation2 + $0x2e8] sm:$0xff] %v4798_v2  ;;  %352 = vst [vmem:[#allocation2 + $0x2f0] sm:$0xff] %v4798_v2  ;;  %4136 = vmatpush3.bf16.msra.mxu0 %v4718_v22  ;;  %3945 = vmatprep.subr.bf16.mxu1 %v4719_v25  ;;  %v5183_v0 = vld [vmem:[%s4955_s20 + $0xe8] sm:$0xff]  ;;  %v4731_v3 = vld [vmem:[%s5949_s1 + $0x170] sm:$0xff]  }
  0x21   : > { %353 = vst [vmem:[#allocation2 + $0x2f8] sm:$0xff] %v4798_v2  ;;  %354 = vst [vmem:[#allocation2 + $0x300] sm:$0xff] %v4798_v2  ;;  %4137 = vmatprep.subr.bf16.mxu0 %v4720_v26  ;;  %v4729_v1 = vld [vmem:[%s5949_s1 + $0x168] sm:$0xff]   ;;  %v4737_v6 = vld [vmem:[%s5949_s1 + $0x30] sm:$0xff]  }
  0x22   : > { %355 = vst [vmem:[#allocation2 + $0x308] sm:$0xff] %v4798_v2  ;;  %356 = vst [vmem:[#allocation2 + $0x310] sm:$0xff] %v4798_v2  ;;  %v4732_v10 = vld [vmem:[%s5949_s1 + $0x178] sm:$0xff]   ;;  %v4736_v22 = vld [vmem:[%s5949_s1 + $0x188] sm:$0xff]  }
  0x23   : > { %357 = vst [vmem:[#allocation2 + $0x318] sm:$0xff] %v4798_v2  ;;  %358 = vst [vmem:[#allocation2 + $0x320] sm:$0xff] %v4798_v2  ;;  %3946 = vmatpush3.bf16.msra.mxu1 %v4719_v25  ;;  %v4739_v11 = vld [vmem:[%s5949_s1 + $0x38] sm:$0xff]   ;;  %v5236_v25 = vld [vmem:[%s4955_s20 + $0xf0] sm:$0xff] }
  0x24   : > { %359 = vst [vmem:[#allocation2 + $0x328] sm:$0xff] %v4798_v2  ;;  %360 = vst [vmem:[#allocation2 + $0x330] sm:$0xff] %v4798_v2  ;;  %4138 = vmatpush3.bf16.msra.mxu0 %v4720_v26  ;;  %3979 = vmatprep.subr.bf16.mxu1 %v4721_v31  ;;  %v5240_v26 = vld [vmem:[%s4955_s20 + $0xf8] sm:$0xff] }
  0x25   : > { %361 = vst [vmem:[#allocation2 + $0x338] sm:$0xff] %v4798_v2  ;;  %362 = vst [vmem:[#allocation2 + $0x340] sm:$0xff] %v4798_v2  ;;  %4171 = vmatprep.subr.bf16.mxu0 %v4722_v32 }
  0x26   : > { %363 = vst [vmem:[#allocation2 + $0x348] sm:$0xff] %v4798_v2  ;;  %400 = vst [vmem:[#allocation2 + $0x11] sm:$0xff] %v226_v13  ;;  %3948 = vmatmul.mubr.bf16.vlgmr.msra.gmra.mrb[0].mxu1 %v4965_v16  ;;  %v4735_v2 = vld [vmem:[%s5949_s1 + $0x28] sm:$0xff]  }
  0x27   : > { %401 = vst [vmem:[#allocation2 + $0x19] sm:$0x7f] %v227_v14  ;;  %433 = vst [vmem:[#allocation2 + $0x24f] sm:$0xfe] %v226_v13  ;;  %4140 = vmatmul.mubr.bf16.vlgmr.msra.gmra.mrb[0].mxu0 %v1659_v36  ;;  %3980 = vmatpush3.bf16.msra.mxu1 %v4721_v31 }
  0x28   : > { %434 = vst [vmem:[#allocation2 + $0x257] sm:$0xff] %v227_v14  ;;  %369 = vst [vmem:[#allocation2 + $0x140] sm:$0xff] %v4968_v17  ;;  %4172 = vmatpush3.bf16.msra.mxu0 %v4722_v32  ;;  %3951 = vmatprep.mubr.bf16.mxu1 %v1659_v36  ;;  %v4734_v14 = vld [vmem:[%s5949_s1 + $0x180] sm:$0xff]   ;;  %v574_v32 = vpack.c.bf16 %v5137_v54, %v5134_v53 }
  0x29   : > { %402 = vst [vmem:[#allocation2 + $0x21] sm:$0xff] %v4968_v17  ;;  %435 = vst [vmem:[#allocation2 + $0x25f] sm:$0xfe] %v4968_v17  ;;  %4173 = vmatprep.subr.bf16.mxu0 %v4723_v38  ;;  %4143 = vmatprep.mubr.bf16.mxu0 %v1660_v39  ;;  %v571_v17 = vpack.c.bf16 %v5085_v42, %v5082_v41 }
  0x2a   : > { %370 = vst [vmem:[#allocation2 + $0x148] sm:$0xff] %v4971_v18  ;;  %403 = vst [vmem:[#allocation2 + $0x29] sm:$0x7f] %v4971_v18  ;;  %3981 = vmatprep.subr.bf16.mxu1 %v4724_v40 }
  0x2b   : > { %436 = vst [vmem:[#allocation2 + $0x267] sm:$0xff] %v4971_v18  ;;  %371 = vst [vmem:[#allocation2 + $0x150] sm:$0xff] %v4984_v20  ;;  %3982 = vmatpush3.bf16.msra.mxu1 %v4724_v40  ;;  %v5222_v18 = vld [vmem:[%s5949_s1 + $0x80] sm:$0xff]   ;;  %v575_v40 = vpack.c.bf16 %v5149_v56, %v5146_v55 }
  0x2c   : > { %372 = vst [vmem:[#allocation2 + $0x158] sm:$0xff] %v4987_v21  ;;  %404 = vst [vmem:[#allocation2 + $0x31] sm:$0xff] %v4984_v20  ;;  %4174 = vmatpush3.bf16.msra.mxu0 %v4723_v38  ;;  %3983 = vmatprep.subr.bf16.mxu1 %v4727_v43 }
  0x2d   : > { %405 = vst [vmem:[#allocation2 + $0x39] sm:$0x7f] %v4987_v21  ;;  %437 = vst [vmem:[#allocation2 + $0x26f] sm:$0xfe] %v4984_v20  ;;  %4175 = vmatprep.subr.bf16.mxu0 %v4725_v44  ;;  %v572_v20 = vpack.c.bf16 %v5103_v46, %v5100_v45 }
  0x2e   : > { %438 = vst [vmem:[#allocation2 + $0x277] sm:$0xff] %v4987_v21  ;;  %373 = vst [vmem:[#allocation2 + $0x160] sm:$0xff] %v4999_v23  ;;  %3952 = vmatmul.mubr.bf16.gmra.mrb[4].mxu1 %v1660_v39  ;;  %v4742_v39 = vld [vmem:[%s5949_s1 + $0x1a0] sm:$0xff]  }
  0x2f   : > { %374 = vst [vmem:[#allocation2 + $0x168] sm:$0xff] %v5002_v24  ;;  %406 = vst [vmem:[#allocation2 + $0x41] sm:$0xff] %v4999_v23  ;;  %4144 = vmatmul.mubr.bf16.gmra.mrb[4].mxu0 %v1661_v48  ;;  %3955 = vmatprep.mubr.bf16.mxu1 %v1661_v48  ;;  %v1932_v4 = vld [vmem:[#allocation2 + $0x250] sm:$0xff]  ;;  %v1933_v5 = vld [vmem:[#allocation2 + $0x258] sm:$0xff] }
  0x30   : > { %407 = vst [vmem:[#allocation2 + $0x49] sm:$0x7f] %v5002_v24  ;;  %439 = vst [vmem:[#allocation2 + $0x27f] sm:$0xfe] %v4999_v23  ;;  %4176 = vmatpush3.bf16.msra.mxu0 %v4725_v44  ;;  %4147 = vmatprep.mubr.bf16.mxu0 %v1662_v50  ;;  %v5205_v9 = vpack.c.bf16 %v1933_v5, %v1932_v4  ;;  %v4744_v44 = vld [vmem:[%s5949_s1 + $0x1a8] sm:$0xff]  }
  0x31   : > { %440 = vst [vmem:[#allocation2 + $0x287] sm:$0xff] %v5002_v24  ;;  %375 = vst [vmem:[#allocation2 + $0x170] sm:$0xff] %v5017_v27  ;;  %4177 = vmatprep.subr.bf16.mxu0 %v4726_v51  ;;  %3984 = vmatpush3.bf16.msra.mxu1 %v4727_v43  ;;  %v4743_v5 = vld [vmem:[%s5949_s1 + $0x88] sm:$0xff]  }
  0x32   : > { %408 = vst [vmem:[#allocation2 + $0x51] sm:$0xff] %v5017_v27  ;;  %441 = vst [vmem:[#allocation2 + $0x28f] sm:$0xfe] %v5017_v27  ;;  %3985 = vmatprep.subr.bf16.mxu1 %v4730_v52  ;;  %v1934_v12 = vld [vmem:[#allocation2 + $0x260] sm:$0xff]  ;;  %v1935_v13 = vld [vmem:[#allocation2 + $0x268] sm:$0xff] }
  0x33   : > { %376 = vst [vmem:[#allocation2 + $0x178] sm:$0xff] %v5020_v28  ;;  %409 = vst [vmem:[#allocation2 + $0x59] sm:$0x7f] %v5020_v28  ;;  %v5224_v19 = vpack.c.bf16 %v1935_v13, %v1934_v12  ;;  %v4745_v13 = vld [vmem:[%s5949_s1 + $0x90] sm:$0xff]  }
  0x34   : > { %442 = vst [vmem:[#allocation2 + $0x297] sm:$0xff] %v5020_v28  ;;  %377 = vst [vmem:[#allocation2 + $0x180] sm:$0xff] %v5029_v29  ;;  %4178 = vmatpush3.bf16.msra.mxu0 %v4726_v51  ;;  %v472_v4 = vld [vmem:[#allocation2 + $0x38] sm:$0xff] }
  0x35   : > { %378 = vst [vmem:[#allocation2 + $0x188] sm:$0xff] %v5032_v30  ;;  %410 = vst [vmem:[#allocation2 + $0x61] sm:$0xff] %v5029_v29  ;;  %4179 = vmatprep.subr.bf16.mxu0 %v4728_v57  ;;  %3986 = vmatpush3.bf16.msra.mxu1 %v4730_v52  ;;  %v1936_v15 = vld [vmem:[#allocation2 + $0x270] sm:$0xff]  ;;  %v1937_v16 = vld [vmem:[#allocation2 + $0x278] sm:$0xff] }
  0x36   : > { %411 = vst [vmem:[#allocation2 + $0x69] sm:$0x7f] %v5032_v30  ;;  %443 = vst [vmem:[#allocation2 + $0x29f] sm:$0xfe] %v5029_v29  ;;  %3956 = vmatmul.mubr.bf16.gmra.mrb[8].mxu1 %v1662_v50  ;;  %3987 = vmatprep.subr.bf16.mxu1 %v4733_v58  ;;  %v5228_v21 = vpack.c.bf16 %v1937_v16, %v1936_v15  ;;  %v4738_v29 = vld [vmem:[%s5949_s1 + $0x190] sm:$0xff]   ;;  %v5285_v50 = vpack.c.bf16 %v5183_v0, %v5180_v63 }
  0x37   : > { %444 = vst [vmem:[#allocation2 + $0x2a7] sm:$0xff] %v5032_v30  ;;  %379 = vst [vmem:[#allocation2 + $0x190] sm:$0xff] %v5047_v33  ;;  %4148 = vmatmul.mubr.bf16.gmra.mrb[8].mxu0 %v1663_v60  ;;  %3959 = vmatprep.mubr.bf16.mxu1 %v1663_v60  ;;  %v573_v30 = vpack.c.bf16 %v5117_v49, %v5112_v47 }
  0x38   : > { %380 = vst [vmem:[#allocation2 + $0x198] sm:$0xff] %v5050_v34  ;;  %412 = vst [vmem:[#allocation2 + $0x71] sm:$0xff] %v5047_v33  ;;  %4180 = vmatpush3.bf16.msra.mxu0 %v4728_v57  ;;  %4151 = vmatprep.mubr.bf16.mxu0 %v1664_v62  ;;  %v1938_v23 = vld [vmem:[#allocation2 + $0x280] sm:$0xff]  ;;  %v1939_v24 = vld [vmem:[#allocation2 + $0x288] sm:$0xff] }
  0x39   : > { %413 = vst [vmem:[#allocation2 + $0x79] sm:$0x7f] %v5050_v34  ;;  %445 = vst [vmem:[#allocation2 + $0x2af] sm:$0xfe] %v5047_v33  ;;  %4181 = vmatprep.subr.bf16.mxu0 %v4729_v1  ;;  %3988 = vmatpush3.bf16.msra.mxu1 %v4733_v58  ;;  %v5253_v31 = vpack.c.bf16 %v1939_v24, %v1938_v23  ;;  %v469_v58 = vld [vmem:[#allocation2 + $0x20] sm:$0xff] }
  0x3a   : > { %446 = vst [vmem:[#allocation2 + $0x2b7] sm:$0xff] %v5050_v34  ;;  %381 = vst [vmem:[#allocation2 + $0x1a0] sm:$0xff] %v5059_v35  ;;  %3989 = vmatprep.subr.bf16.mxu1 %v4735_v2  ;;  %v4740_v34 = vld [vmem:[%s5949_s1 + $0x198] sm:$0xff]  }
  0x3b   : > { %414 = vst [vmem:[#allocation2 + $0x81] sm:$0xff] %v5059_v35  ;;  %447 = vst [vmem:[#allocation2 + $0x2bf] sm:$0xfe] %v5059_v35  ;;  %v1940_v27 = vld [vmem:[#allocation2 + $0x290] sm:$0xff]  ;;  %v1941_v28 = vld [vmem:[#allocation2 + $0x298] sm:$0xff] }
  0x3c   : > { %382 = vst [vmem:[#allocation2 + $0x1a8] sm:$0xff] %v5064_v37  ;;  %415 = vst [vmem:[#allocation2 + $0x89] sm:$0x7f] %v5064_v37  ;;  %4182 = vmatpush3.bf16.msra.mxu0 %v4729_v1  ;;  %v5257_v33 = vpack.c.bf16 %v1941_v28, %v1940_v27  ;;  %v476_v23 = vld [vmem:[#allocation2 + $0x58] sm:$0xff]  ;;  %v477_v28 = vld [vmem:[#allocation2 + $0x60] sm:$0xff] }
  0x3d   : > { %448 = vst [vmem:[#allocation2 + $0x2c7] sm:$0xff] %v5064_v37  ;;  %383 = vst [vmem:[#allocation2 + $0x1b0] sm:$0xff] %v5082_v41  ;;  %4183 = vmatprep.subr.bf16.mxu0 %v4731_v3  ;;  %3990 = vmatpush3.bf16.msra.mxu1 %v4735_v2 }
  0x3e   : > { %384 = vst [vmem:[#allocation2 + $0x1b8] sm:$0xff] %v5085_v42  ;;  %416 = vst [vmem:[#allocation2 + $0x91] sm:$0xff] %v5082_v41  ;;  %3960 = vmatmul.mubr.bf16.gmra.mrb[12].mxu1 %v1664_v62  ;;  %3991 = vmatprep.subr.bf16.mxu1 %v4737_v6  ;;  %v1942_v35 = vld [vmem:[#allocation2 + $0x2a0] sm:$0xff]  ;;  %v1943_v36 = vld [vmem:[#allocation2 + $0x2a8] sm:$0xff] }
  0x3f   : > { %417 = vst [vmem:[#allocation2 + $0x99] sm:$0x7f] %v5085_v42  ;;  %449 = vst [vmem:[#allocation2 + $0x2cf] sm:$0xfe] %v5082_v41  ;;  %4152 = vmatmul.mubr.bf16.gmra.mrb[12].mxu0 %v1665_v8  ;;  %3963 = vmatprep.mubr.bf16.mxu1 %v1665_v8  ;;  %v5269_v41 = vpack.c.bf16 %v1943_v36, %v1942_v35  ;;  %v5301_v62 = vld [vmem:[%s5949_s1 + $0x1c0] sm:$0xff]  }
  0x40   : > { %450 = vst [vmem:[#allocation2 + $0x2d7] sm:$0xff] %v5085_v42  ;;  %385 = vst [vmem:[#allocation2 + $0x1c0] sm:$0xff] %v5100_v45  ;;  %4184 = vmatpush3.bf16.msra.mxu0 %v4731_v3  ;;  %4187 = vmatprep.mubr.bf16.mxu0 %v5205_v9  ;;  %v576_v42 = vpack.c.bf16 %v5169_v61, %v5164_v59  ;;  %v471_v3 = vld [vmem:[#allocation2 + $0x30] sm:$0xff] }
  0x41   : > { %386 = vst [vmem:[#allocation2 + $0x1c8] sm:$0xff] %v5103_v46  ;;  %418 = vst [vmem:[#allocation2 + $0xa1] sm:$0xff] %v5100_v45  ;;  %4185 = vmatprep.subr.bf16.mxu0 %v4732_v10  ;;  %3992 = vmatpush3.bf16.msra.mxu1 %v4737_v6  ;;  %v1944_v37 = vld [vmem:[#allocation2 + $0x2b0] sm:$0xff]  ;;  %v1945_v38 = vld [vmem:[#allocation2 + $0x2b8] sm:$0xff]  ;;  %v5323_v15 = vpack.c.bf16 %v472_v4, %v471_v3 }
  0x42   : > { %419 = vst [vmem:[#allocation2 + $0xa9] sm:$0x7f] %v5103_v46  ;;  %451 = vst [vmem:[#allocation2 + $0x2df] sm:$0xfe] %v5100_v45  ;;  %3993 = vmatprep.subr.bf16.mxu1 %v4739_v11  ;;  %v5273_v43 = vpack.c.bf16 %v1945_v38, %v1944_v37  ;;  %v4752_v4 = vld [vmem:[%s5949_s1 + $0x1c8] sm:$0xff]  }
  0x43   : > { %452 = vst [vmem:[#allocation2 + $0x2e7] sm:$0xff] %v5103_v46  ;;  %387 = vst [vmem:[#allocation2 + $0x1d0] sm:$0xff] %v5112_v47 }
  0x44   : > { %420 = vst [vmem:[#allocation2 + $0xb1] sm:$0xff] %v5112_v47  ;;  %453 = vst [vmem:[#allocation2 + $0x2ef] sm:$0xfe] %v5112_v47  ;;  %4186 = vmatpush3.bf16.msra.mxu0 %v4732_v10  ;;  %v1946_v45 = vld [vmem:[#allocation2 + $0x2c0] sm:$0xff]  ;;  %v1947_v46 = vld [vmem:[#allocation2 + $0x2c8] sm:$0xff] }
  0x45   : > { %388 = vst [vmem:[#allocation2 + $0x1d8] sm:$0xff] %v5117_v49  ;;  %421 = vst [vmem:[#allocation2 + $0xb9] sm:$0x7f] %v5117_v49  ;;  %4219 = vmatprep.subr.bf16.mxu0 %v4734_v14  ;;  %3994 = vmatpush3.bf16.msra.mxu1 %v4739_v11  ;;  %v5287_v51 = vpack.c.bf16 %v1947_v46, %v1946_v45  ;;  %v473_v10 = vld [vmem:[#allocation2 + $0x40] sm:$0xff]  ;;  %v474_v11 = vld [vmem:[#allocation2 + $0x48] sm:$0xff] }
  0x46   : > { %454 = vst [vmem:[#allocation2 + $0x2f7] sm:$0xff] %v5117_v49  ;;  %389 = vst [vmem:[#allocation2 + $0x1e0] sm:$0xff] %v5134_v53  ;;  %3964 = vmatmul.mubr.bf16.gmra.mrb[16].mxu1 %v571_v17  ;;  %4027 = vmatprep.subr.bf16.mxu1 %v5222_v18  ;;  %v4746_v49 = vld [vmem:[%s5949_s1 + $0x1b0] sm:$0xff]   ;;  %v5327_v17 = vpack.c.bf16 %v474_v11, %v473_v10 }
  0x47   : > { %390 = vst [vmem:[#allocation2 + $0x1e8] sm:$0xff] %v5137_v54  ;;  %422 = vst [vmem:[#allocation2 + $0xc1] sm:$0xff] %v5134_v53  ;;  %4188 = vmatmul.mubr.bf16.vlgmr.msra.gmra.mrb[0].mxu0 %v5224_v19  ;;  %3967 = vmatprep.mubr.bf16.mxu1 %v572_v20  ;;  %v1948_v47 = vld [vmem:[#allocation2 + $0x2d0] sm:$0xff]  ;;  %v1949_v48 = vld [vmem:[#allocation2 + $0x2d8] sm:$0xff] }
  0x48   : > { %423 = vst [vmem:[#allocation2 + $0xc9] sm:$0x7f] %v5137_v54  ;;  %455 = vst [vmem:[#allocation2 + $0x2ff] sm:$0xfe] %v5134_v53  ;;  %4220 = vmatpush3.bf16.msra.mxu0 %v4734_v14  ;;  %4191 = vmatprep.mubr.bf16.mxu0 %v5228_v21  ;;  %v5289_v52 = vpack.c.bf16 %v1949_v48, %v1948_v47  ;;  %v467_v53 = vld [vmem:[#allocation2 + $0x10] sm:$0xff]  ;;  %v482_v47 = vld [vmem:[#allocation2 + $0x88] sm:$0xff] }
  0x49   : > { %456 = vst [vmem:[#allocation2 + $0x307] sm:$0xff] %v5137_v54  ;;  %391 = vst [vmem:[#allocation2 + $0x1f0] sm:$0xff] %v5146_v55  ;;  %4221 = vmatprep.subr.bf16.mxu0 %v4736_v22  ;;  %v468_v54 = vld [vmem:[#allocation2 + $0x18] sm:$0xff]  ;;  %v475_v20 = vld [vmem:[#allocation2 + $0x50] sm:$0xff] }
  0x4a   : > { %392 = vst [vmem:[#allocation2 + $0x1f8] sm:$0xff] %v5149_v56  ;;  %424 = vst [vmem:[#allocation2 + $0xd1] sm:$0xff] %v5146_v55  ;;  %v1951_v57 = vld [vmem:[#allocation2 + $0x2e8] sm:$0xff]  ;;  %v5341_v35 = vpack.c.bf16 %v476_v23, %v475_v20  ;;  %v4753_v48 = vld [vmem:[%s5949_s1 + $0xb0] sm:$0xff]  }
  0x4b   : > { %425 = vst [vmem:[#allocation2 + $0xd9] sm:$0x7f] %v5149_v56  ;;  %457 = vst [vmem:[#allocation2 + $0x30f] sm:$0xfe] %v5146_v55  ;;  %v4748_v55 = vld [vmem:[%s5949_s1 + $0x1b8] sm:$0xff]   ;;  %v4754_v11 = vld [vmem:[%s5949_s1 + $0x1d0] sm:$0xff]  }
  0x4c   : > { %458 = vst [vmem:[#allocation2 + $0x317] sm:$0xff] %v5149_v56  ;;  %393 = vst [vmem:[#allocation2 + $0x200] sm:$0xff] %v5164_v59  ;;  %4222 = vmatpush3.bf16.msra.mxu0 %v4736_v22  ;;  %v1950_v56 = vld [vmem:[#allocation2 + $0x2e0] sm:$0xff]  ;;  %v4747_v22 = vld [vmem:[%s5949_s1 + $0x98] sm:$0xff]  }
  0x4d   : > { %426 = vst [vmem:[#allocation2 + $0xe1] sm:$0xff] %v5164_v59  ;;  %459 = vst [vmem:[#allocation2 + $0x31f] sm:$0xfe] %v5164_v59  ;;  %4223 = vmatprep.subr.bf16.mxu0 %v4738_v29  ;;  %v470_v59 = vld [vmem:[#allocation2 + $0x28] sm:$0xff]  ;;  %v1952_v60 = vld [vmem:[#allocation2 + $0x2f0] sm:$0xff] }
  0x4e   : > { %394 = vst [vmem:[#allocation2 + $0x208] sm:$0xff] %v5169_v61  ;;  %427 = vst [vmem:[#allocation2 + $0xe9] sm:$0x7f] %v5169_v61  ;;  %3968 = vmatmul.mubr.bf16.gmra.mrb[20].mxu1 %v573_v30  ;;  %v5307_v1 = vpack.c.bf16 %v470_v59, %v469_v58  ;;  %v485_v58 = vld [vmem:[#allocation2 + $0xa0] sm:$0xff]  ;;  %v486_v59 = vld [vmem:[#allocation2 + $0xa8] sm:$0xff] }
  0x4f   : > { %460 = vst [vmem:[#allocation2 + $0x327] sm:$0xff] %v5169_v61  ;;  %395 = vst [vmem:[#allocation2 + $0x210] sm:$0xff] %v5180_v63  ;;  %4192 = vmatmul.mubr.bf16.gmra.mrb[4].mxu0 %v5253_v31  ;;  %3971 = vmatprep.mubr.bf16.mxu1 %v574_v32  ;;  %v1953_v61 = vld [vmem:[#allocation2 + $0x2f8] sm:$0xff]  ;;  %v5376_v3 = vpack.c.bf16 %v486_v59, %v485_v58  ;;  %v490_v10 = vld [vmem:[#allocation2 + $0xc8] sm:$0xff] }
  0x50   : > { %396 = vst [vmem:[#allocation2 + $0x218] sm:$0xff] %v5183_v0  ;;  %428 = vst [vmem:[#allocation2 + $0xf1] sm:$0xff] %v5180_v63  ;;  %4195 = vmatprep.mubr.bf16.mxu0 %v5257_v33  ;;  %4224 = vmatpush3.bf16.msra.mxu0 %v4738_v29  ;;  %v5309_v2 = vpack.c.bf16 %v1953_v61, %v1952_v60  ;;  %v1954_v6 = vld [vmem:[#allocation2 + $0x300] sm:$0xff]  ;;  %v1955_v8 = vld [vmem:[#allocation2 + $0x308] sm:$0xff] }
  0x51   : > { %429 = vst [vmem:[#allocation2 + $0xf9] sm:$0x7f] %v5183_v0  ;;  %461 = vst [vmem:[#allocation2 + $0x32f] sm:$0xfe] %v5180_v63  ;;  %4225 = vmatprep.subr.bf16.mxu0 %v4740_v34  ;;  %v5303_v63 = vpack.c.bf16 %v468_v54, %v467_v53  ;;  %v5325_v16 = vpack.c.bf16 %v1955_v8, %v1954_v6  ;;  %v478_v29 = vld [vmem:[#allocation2 + $0x68] sm:$0xff]  ;;  %v5372_v60 = vld [vmem:[%s5949_s1 + $0xc0] sm:$0xff]  }
  0x52   : > { %462 = vst [vmem:[#allocation2 + $0x337] sm:$0xff] %v5183_v0  ;;  %463 = vst [vmem:[#allocation2 + $0x33f] sm:$0xfe] %v5236_v25  ;;  %v5305_v0 = vpack.c.bf16 %v1951_v57, %v1950_v56  ;;  %v5345_v37 = vpack.c.bf16 %v478_v29, %v477_v28  ;;  %v483_v56 = vld [vmem:[#allocation2 + $0x90] sm:$0xff]  ;;  %v484_v57 = vld [vmem:[#allocation2 + $0x98] sm:$0xff] }
  0x53   : > { %397 = vst [vmem:[#allocation2 + $0x220] sm:$0xff] %v5236_v25  ;;  %430 = vst [vmem:[#allocation2 + $0x101] sm:$0xff] %v5236_v25  ;;  %v1956_v12 = vld [vmem:[#allocation2 + $0x310] sm:$0xff]  ;;  %v1957_v14 = vld [vmem:[#allocation2 + $0x318] sm:$0xff]  ;;  %v5374_v61 = vpack.c.bf16 %v484_v57, %v483_v56 }
  0x54   : > { %464 = vst [vmem:[#allocation2 + $0x347] sm:$0xff] %v5240_v26  ;;  %398 = vst [vmem:[#allocation2 + $0x228] sm:$0xff] %v5240_v26  ;;  %4226 = vmatpush3.bf16.msra.mxu0 %v4740_v34  ;;  %v4749_v34 = vld [vmem:[%s5949_s1 + $0xa0] sm:$0xff]   ;;  %v488_v6 = vld [vmem:[#allocation2 + $0xb8] sm:$0xff] }
  0x55   : > { %431 = vst [vmem:[#allocation2 + $0x109] sm:$0x7f] %v5240_v26  ;;  %4227 = vmatprep.subr.bf16.mxu0 %v4742_v39  ;;  %v489_v8 = vld [vmem:[#allocation2 + $0xc0] sm:$0xff]  ;;  %v492_v20 = vld [vmem:[#allocation2 + $0xd8] sm:$0xff]  ;;  %v494_v23 = vld [vmem:[#allocation2 + $0xe8] sm:$0xff] }
  0x56   : > { %3972 = vmatmul.mubr.bf16.gmra.mrb[24].mxu1 %v575_v40  ;;  %v1958_v24 = vld [vmem:[#allocation2 + $0x320] sm:$0xff]  ;;  %v1959_v27 = vld [vmem:[#allocation2 + $0x328] sm:$0xff]  ;;  %v479_v40 = vld [vmem:[#allocation2 + $0x70] sm:$0xff] }
  0x57   : > { %4196 = vmatmul.mubr.bf16.gmra.mrb[8].mxu0 %v5269_v41  ;;  %3975 = vmatprep.mubr.bf16.mxu1 %v576_v42  ;;  %v5343_v36 = vpack.c.bf16 %v1959_v27, %v1958_v24  ;;  %v480_v42 = vld [vmem:[#allocation2 + $0x78] sm:$0xff]  ;;  %v4758_v24 = vld [vmem:[%s5949_s1 + $0x1e0] sm:$0xff]   ;;  %v4760_v29 = vld [vmem:[%s5949_s1 + $0x1e8] sm:$0xff]  }
  0x58   : > { %4199 = vmatprep.mubr.bf16.mxu0 %v5273_v43  ;;  %4228 = vmatpush3.bf16.msra.mxu0 %v4742_v39  ;;  %v4751_v39 = vld [vmem:[%s5949_s1 + $0xa8] sm:$0xff]   ;;  %v4769_v57 = vld [vmem:[%s5949_s1 + $0xf0] sm:$0xff]   ;;  %v2549_v59 = vld [vmem:[#allocation2 + $0x158] sm:$0xff] }
  0x59   : > { %4229 = vmatprep.subr.bf16.mxu0 %v4744_v44  ;;  %v1960_v30 = vld [vmem:[#allocation2 + $0x330] sm:$0xff]  ;;  %v1961_v32 = vld [vmem:[#allocation2 + $0x338] sm:$0xff]  ;;  %v2547_v56 = vld [vmem:[#allocation2 + $0x148] sm:$0xff] }
  0x5a   : > { %v5347_v38 = vpack.c.bf16 %v1961_v32, %v1960_v30  ;;  %v495_v30 = vld [vmem:[#allocation2 + $0xf0] sm:$0xff]  ;;  %v496_v32 = vld [vmem:[#allocation2 + $0xf8] sm:$0xff] }
  0x5b   : > { %v1962_v45 = vld [vmem:[#allocation2 + $0x340] sm:$0xff]  ;;  %v1963_v46 = vld [vmem:[#allocation2 + $0x348] sm:$0xff] }
  0x5c   : > { %4230 = vmatpush3.bf16.msra.mxu0 %v4744_v44  ;;  %v481_v44 = vld [vmem:[#allocation2 + $0x80] sm:$0xff]  ;;  %v1979_v53 = vpack.c.bf16 %v1963_v46, %v1962_v45  ;;  %v4759_v46 = vld [vmem:[%s5949_s1 + $0xc8] sm:$0xff]  }
  0x5d   : > { %4231 = vmatprep.subr.bf16.mxu0 %v4746_v49  ;;  %v5361_v54 = vpack.c.bf16 %v482_v47, %v481_v44  ;;  %v4764_v44 = vld [vmem:[%s5949_s1 + $0x1f8] sm:$0xff]   ;;  %v4766_v45 = vld [vmem:[%s5949_s1 + $0x200] sm:$0xff]   ;;  %v4761_v47 = vld [vmem:[%s5949_s1 + $0xd0] sm:$0xff]  }
  0x5e   : > { %3976 = vmatmul.mubr.bf16.gmra.mrb[28].mxu1 %v5285_v50 }
  0x5f   : > { %4200 = vmatmul.mubr.bf16.gmra.mrb[12].mxu0 %v5287_v51  ;;  %3995 = vmatprep.mubr.bf16.mxu1 %v4799_v7 }
  0x60   : > { %4203 = vmatprep.mubr.bf16.mxu0 %v5289_v52  ;;  %4232 = vmatpush3.bf16.msra.mxu0 %v4746_v49  ;;  %v5359_v49 = vpack.c.bf16 %v480_v42, %v479_v40  ;;  %v5420_v40 = vld [vmem:[#allocation2 + $0x120] sm:$0xff] }
  0x61   : > { %4233 = vmatprep.subr.bf16.mxu0 %v4748_v55  ;;  %v5424_v42 = vpack.c.bf16 %v5420_v40, %v5420_v40 }
  0x64   : > { %4234 = vmatpush3.bf16.msra.mxu0 %v4748_v55  ;;  %v4755_v55 = vld [vmem:[%s5949_s1 + $0xb8] sm:$0xff]  }
  0x65   : > { %4267 = vmatprep.subr.bf16.mxu0 %v5301_v62 }
  0x66   : > { %3996 = vmatmul.mubr.bf16.vlgmr.msra.gmra.mrb[0].mxu1 %v5303_v63 }
  0x67   : > { %4204 = vmatmul.mubr.bf16.gmra.mrb[16].mxu0 %v5305_v0  ;;  %4028 = vmatpush3.bf16.msra.mxu1 %v5222_v18  ;;  %v5329_v18 = vpack.c.bf16 %v1957_v14, %v1956_v12  ;;  %v4756_v14 = vld [vmem:[%s5949_s1 + $0x1d8] sm:$0xff]  }
  0x68   : > { %3999 = vmatprep.mubr.bf16.mxu1 %v5307_v1  ;;  %4207 = vmatprep.mubr.bf16.mxu0 %v5309_v2 }
  0x69   : > { %4029 = vmatprep.subr.bf16.mxu1 %v4743_v5 }
  0x6b   : > { %4030 = vmatpush3.bf16.msra.mxu1 %v4743_v5  ;;  %v487_v5 = vld [vmem:[#allocation2 + $0xb0] sm:$0xff] }
  0x6c   : > { %4031 = vmatprep.subr.bf16.mxu1 %v4745_v13  ;;  %v5390_v12 = vpack.c.bf16 %v488_v6, %v487_v5 }
  0x6e   : > { %4000 = vmatmul.mubr.bf16.gmra.mrb[4].mxu1 %v5323_v15 }
  0x6f   : > { %4208 = vmatmul.mubr.bf16.gmra.mrb[20].mxu0 %v5325_v16  ;;  %4003 = vmatprep.mubr.bf16.mxu1 %v5327_v17 }
  0x70   : > { %4211 = vmatprep.mubr.bf16.mxu0 %v5329_v18  ;;  %4032 = vmatpush3.bf16.msra.mxu1 %v4745_v13  ;;  %v5392_v13 = vpack.c.bf16 %v490_v10, %v489_v8  ;;  %v4768_v8 = vld [vmem:[%s5949_s1 + $0x208] sm:$0xff]   ;;  %v2553_v10 = vld [vmem:[#allocation2 + $0x178] sm:$0xff] }
  0x71   : > { %4033 = vmatprep.subr.bf16.mxu1 %v4747_v22 }
  0x74   : > { %4034 = vmatpush3.bf16.msra.mxu1 %v4747_v22  ;;  %v493_v22 = vld [vmem:[#allocation2 + $0xe0] sm:$0xff] }
  0x75   : > { %4035 = vmatprep.subr.bf16.mxu1 %v4749_v34  ;;  %v5406_v28 = vpack.c.bf16 %v494_v23, %v493_v22  ;;  %v2557_v23 = vld [vmem:[#allocation2 + $0x198] sm:$0xff] }
  0x76   : > { %4004 = vmatmul.mubr.bf16.gmra.mrb[8].mxu1 %v5341_v35 }
  0x77   : > { %4212 = vmatmul.mubr.bf16.gmra.mrb[24].mxu0 %v5343_v36  ;;  %4007 = vmatprep.mubr.bf16.mxu1 %v5345_v37 }
  0x78   : > { %4215 = vmatprep.mubr.bf16.mxu0 %v5347_v38  ;;  %4036 = vmatpush3.bf16.msra.mxu1 %v4749_v34  ;;  %v4762_v34 = vld [vmem:[%s5949_s1 + $0x1f0] sm:$0xff]  }
  0x79   : > { %4037 = vmatprep.subr.bf16.mxu1 %v4751_v39 }
  0x7c   : > { %4038 = vmatpush3.bf16.msra.mxu1 %v4751_v39  ;;  %v5418_v39 = vpack.c.bf16 %v496_v32, %v495_v30  ;;  %v4773_v30 = vld [vmem:[%s5949_s1 + $0x220] sm:$0xff]  }
  0x7d   : > { %4039 = vmatprep.subr.bf16.mxu1 %v4753_v48 }
  0x7e   : > { %4008 = vmatmul.mubr.bf16.gmra.mrb[12].mxu1 %v5359_v49 }
  0x7f   : > { %4216 = vmatmul.mubr.bf16.gmra.mrb[28].mxu0 %v1979_v53  ;;  %4011 = vmatprep.mubr.bf16.mxu1 %v5361_v54  ;;  %v4765_v53 = vld [vmem:[%s5949_s1 + $0xe0] sm:$0xff]  }
  0x80   : > { %4235 = vmatprep.mubr.bf16.mxu0 %v5307_v1  ;;  %4040 = vmatpush3.bf16.msra.mxu1 %v4753_v48  ;;  %v4763_v48 = vld [vmem:[%s5949_s1 + $0xd8] sm:$0xff]  }
  0x81   : > { %4041 = vmatprep.subr.bf16.mxu1 %v4755_v55 }
  0x84   : > { %4042 = vmatpush3.bf16.msra.mxu1 %v4755_v55 }
  0x85   : > { %4075 = vmatprep.subr.bf16.mxu1 %v5372_v60 }
  0x86   : > { %4012 = vmatmul.mubr.bf16.gmra.mrb[16].mxu1 %v5374_v61 }
  0x87   : > { %4236 = vmatmul.mubr.bf16.vlgmr.msra.gmra.mrb[0].mxu0 %v5323_v15  ;;  %4015 = vmatprep.mubr.bf16.mxu1 %v5376_v3 }
  0x88   : > { %4268 = vmatpush3.bf16.msra.mxu0 %v5301_v62  ;;  %4239 = vmatprep.mubr.bf16.mxu0 %v5327_v17  ;;  %v491_v62 = vld [vmem:[#allocation2 + $0xd0] sm:$0xff] }
  0x89   : > { %4269 = vmatprep.subr.bf16.mxu0 %v4752_v4  ;;  %v5404_v27 = vpack.c.bf16 %v492_v20, %v491_v62  ;;  %v4770_v62 = vld [vmem:[%s5949_s1 + $0x210] sm:$0xff]  }
  0x8c   : > { %4270 = vmatpush3.bf16.msra.mxu0 %v4752_v4  ;;  %v2551_v4 = vld [vmem:[#allocation2 + $0x168] sm:$0xff] }
  0x8d   : > { %4271 = vmatprep.subr.bf16.mxu0 %v4754_v11 }
  0x8e   : > { %4016 = vmatmul.mubr.bf16.gmra.mrb[20].mxu1 %v5390_v12 }
  0x8f   : > { %4240 = vmatmul.mubr.bf16.gmra.mrb[4].mxu0 %v5341_v35  ;;  %4019 = vmatprep.mubr.bf16.mxu1 %v5392_v13 }
  0x90   : > { %4243 = vmatprep.mubr.bf16.mxu0 %v5345_v37  ;;  %4272 = vmatpush3.bf16.msra.mxu0 %v4754_v11  ;;  %v2554_v11 = vld [vmem:[#allocation2 + $0x180] sm:$0xff] }
  0x91   : > { %4273 = vmatprep.subr.bf16.mxu0 %v4756_v14 }
  0x94   : > { %4274 = vmatpush3.bf16.msra.mxu0 %v4756_v14  ;;  %v2555_v14 = vld [vmem:[#allocation2 + $0x188] sm:$0xff] }
  0x95   : > { %4275 = vmatprep.subr.bf16.mxu0 %v4758_v24  ;;  %v2582_v22 = vpack.c.bf16 %v2555_v14, %v2554_v11  ;;  %v2862_v11 = vld [vmem:[#allocation2 + $0x2a8] sm:$0xff] }
  0x96   : > { %4020 = vmatmul.mubr.bf16.gmra.mrb[24].mxu1 %v5404_v27 }
  0x97   : > { %4244 = vmatmul.mubr.bf16.gmra.mrb[8].mxu0 %v5359_v49  ;;  %4023 = vmatprep.mubr.bf16.mxu1 %v5406_v28 }
  0x98   : > { %4247 = vmatprep.mubr.bf16.mxu0 %v5361_v54  ;;  %4276 = vmatpush3.bf16.msra.mxu0 %v4758_v24  ;;  %v2558_v24 = vld [vmem:[#allocation2 + $0x1a0] sm:$0xff] }
  0x99   : > { %4277 = vmatprep.subr.bf16.mxu0 %v4760_v29 }
  0x9c   : > { %4278 = vmatpush3.bf16.msra.mxu0 %v4760_v29  ;;  %v2559_v29 = vld [vmem:[#allocation2 + $0x1a8] sm:$0xff] }
  0x9d   : > { %4279 = vmatprep.subr.bf16.mxu0 %v4762_v34 }
  0x9e   : > { %4024 = vmatmul.mubr.bf16.gmra.mrb[28].mxu1 %v5418_v39 }
  0x9f   : > { %4248 = vmatmul.mubr.bf16.gmra.mrb[12].mxu0 %v5374_v61  ;;  %4043 = vmatprep.mubr.bf16.mxu1 %v5424_v42 }
  0xa0   : > { %4251 = vmatprep.mubr.bf16.mxu0 %v5376_v3  ;;  %4280 = vmatpush3.bf16.msra.mxu0 %v4762_v34  ;;  %v2584_v34 = vpack.c.bf16 %v2559_v29, %v2558_v24  ;;  %v2868_v24 = vld [vmem:[#allocation2 + $0x2d8] sm:$0xff]  ;;  %v2869_v29 = vld [vmem:[#allocation2 + $0x2e0] sm:$0xff] }
  0xa1   : > { %4281 = vmatprep.subr.bf16.mxu0 %v4764_v44 }
  0xa4   : > { %4282 = vmatpush3.bf16.msra.mxu0 %v4764_v44  ;;  %v2561_v44 = vld [vmem:[#allocation2 + $0x1b8] sm:$0xff] }
  0xa5   : > { %4315 = vmatprep.subr.bf16.mxu0 %v4766_v45 }
  0xa6   : > { %4044 = vmatmul.mubr.bf16.vlgmr.msra.gmra.mrb[0].mxu1 %v5205_v9  ;;  %v2267_v9 = vld [vmem:[#allocation2 + $0x100] sm:$0xff] }
  0xa7   : > { %4252 = vmatmul.mubr.bf16.gmra.mrb[16].mxu0 %v5390_v12  ;;  %4076 = vmatpush3.bf16.msra.mxu1 %v5372_v60  ;;  %v2550_v60 = vld [vmem:[#allocation2 + $0x160] sm:$0xff] }
  0xa8   : > { %4047 = vmatprep.mubr.bf16.mxu1 %v5224_v19  ;;  %4255 = vmatprep.mubr.bf16.mxu0 %v5392_v13  ;;  %v2268_v19 = vld [vmem:[#allocation2 + $0x108] sm:$0xff]  ;;  %v2580_v6 = vpack.c.bf16 %v2551_v4, %v2550_v60  ;;  %v2592_v60 = vpack.c.bf16 %v5240_v26, %v5236_v25 }
  0xa9   : > { %4077 = vmatprep.subr.bf16.mxu1 %v4759_v46  ;;  %v5457_v55 = vpack.c.bf16 %v2268_v19, %v2267_v9  ;;  %v2565_v19 = vld [vmem:[#allocation2 + $0x1d8] sm:$0xff]  ;;  %v2854_v4 = vld [vmem:[#allocation2 + $0x268] sm:$0xff] }
  0xaa   : > { %v4787_v25 = vld [vmem:[%s5949_s1 + $0x128] sm:$0xff]  }
  0xab   : > { %4078 = vmatpush3.bf16.msra.mxu1 %v4759_v46  ;;  %v2563_v46 = vld [vmem:[#allocation2 + $0x1c8] sm:$0xff] }
  0xac   : > { %4079 = vmatprep.subr.bf16.mxu1 %v4761_v47 }
  0xae   : > { %4048 = vmatmul.mubr.bf16.gmra.mrb[4].mxu1 %v5228_v21  ;;  %v4767_v21 = vld [vmem:[%s5949_s1 + $0xe8] sm:$0xff]  }
  0xaf   : > { %4256 = vmatmul.mubr.bf16.gmra.mrb[20].mxu0 %v5404_v27  ;;  %4051 = vmatprep.mubr.bf16.mxu1 %v5253_v31  ;;  %v2546_v31 = vld [vmem:[#allocation2 + $0x140] sm:$0xff] }
  0xb0   : > { %4259 = vmatprep.mubr.bf16.mxu0 %v5406_v28  ;;  %4080 = vmatpush3.bf16.msra.mxu1 %v4761_v47  ;;  %v2578_v58 = vpack.c.bf16 %v2547_v56, %v2546_v31  ;;  %v4775_v47 = vld [vmem:[%s5949_s1 + $0x230] sm:$0xff]  }
  0xb1   : > { %4081 = vmatprep.subr.bf16.mxu1 %v4763_v48 }
  0xb4   : > { %4082 = vmatpush3.bf16.msra.mxu1 %v4763_v48 }
  0xb5   : > { %4083 = vmatprep.subr.bf16.mxu1 %v4765_v53 }
  0xb6   : > { %4052 = vmatmul.mubr.bf16.gmra.mrb[8].mxu1 %v5257_v33  ;;  %v4771_v33 = vld [vmem:[%s5949_s1 + $0xf8] sm:$0xff]  }
  0xb7   : > { %4260 = vmatmul.mubr.bf16.gmra.mrb[24].mxu0 %v5418_v39  ;;  %4055 = vmatprep.mubr.bf16.mxu1 %v5269_v41  ;;  %v2548_v41 = vld [vmem:[#allocation2 + $0x150] sm:$0xff] }
  0xb8   : > { %4263 = vmatprep.mubr.bf16.mxu0 %v5457_v55  ;;  %4084 = vmatpush3.bf16.msra.mxu1 %v4765_v53  ;;  %v2579_v5 = vpack.c.bf16 %v2549_v59, %v2548_v41  ;;  %v2566_v53 = vld [vmem:[#allocation2 + $0x1e0] sm:$0xff]  ;;  %v4785_v59 = vld [vmem:[%s5949_s1 + $0x118] sm:$0xff]  }
  0xb9   : > { %4085 = vmatprep.subr.bf16.mxu1 %v4767_v21 }
  0xbc   : > { %4086 = vmatpush3.bf16.msra.mxu1 %v4767_v21  ;;  %v2567_v21 = vld [vmem:[#allocation2 + $0x1e8] sm:$0xff] }
  0xbd   : > { %4087 = vmatprep.subr.bf16.mxu1 %v4769_v57  ;;  %v5518_v56 = vpack.c.bf16 %v2567_v21, %v2566_v53  ;;  %v2881_v53 = vld [vmem:[#allocation2 + $0x340] sm:$0xff]  ;;  %v2882_v21 = vld [vmem:[#allocation2 + $0x348] sm:$0xff] }
  0xbe   : > { %4056 = vmatmul.mubr.bf16.gmra.mrb[12].mxu1 %v5273_v43  ;;  %v5481_v43 = vld [vmem:[%s5949_s1 + $0x100] sm:$0xff]  }
  0xbf   : > { %4264 = vmatmul.mubr.bf16.gmra.mrb[28].mxu0 %v5424_v42  ;;  %4059 = vmatprep.mubr.bf16.mxu1 %v5287_v51  ;;  %v2552_v51 = vld [vmem:[#allocation2 + $0x170] sm:$0xff] }
  0xc0   : > { %4283 = vmatprep.mubr.bf16.mxu0 %v2578_v58  ;;  %4088 = vmatpush3.bf16.msra.mxu1 %v4769_v57  ;;  %v2581_v20 = vpack.c.bf16 %v2553_v10, %v2552_v51  ;;  %v4783_v57 = vld [vmem:[%s5949_s1 + $0x108] sm:$0xff]   ;;  %v2570_v58 = vld [vmem:[#allocation2 + $0x200] sm:$0xff] }
  0xc1   : > { %4089 = vmatprep.subr.bf16.mxu1 %v4771_v33  ;;  %v2861_v10 = vld [vmem:[#allocation2 + $0x2a0] sm:$0xff] }
  0xc4   : > { %4090 = vmatpush3.bf16.msra.mxu1 %v4771_v33  ;;  %v2571_v33 = vld [vmem:[#allocation2 + $0x208] sm:$0xff] }
  0xc5   : > { %4422 = vmatprep.subr.bf16.mxu1 %v5481_v43 }
  0xc6   : > { %4060 = vmatmul.mubr.bf16.gmra.mrb[16].mxu1 %v5289_v52  ;;  %v4772_v52 = vld [vmem:[%s5949_s1 + $0x218] sm:$0xff]  }
  0xc7   : > { %4284 = vmatmul.mubr.bf16.vlgmr.msra.gmra.mrb[0].mxu0 %v2579_v5  ;;  %4063 = vmatprep.mubr.bf16.mxu1 %v5305_v0  ;;  %v2556_v0 = vld [vmem:[#allocation2 + $0x190] sm:$0xff] }
  0xc8   : > { %4316 = vmatpush3.bf16.msra.mxu0 %v4766_v45  ;;  %4287 = vmatprep.mubr.bf16.mxu0 %v2580_v6  ;;  %v2583_v32 = vpack.c.bf16 %v2557_v23, %v2556_v0  ;;  %v2562_v45 = vld [vmem:[#allocation2 + $0x1c0] sm:$0xff]  ;;  %v4788_v5 = vld [vmem:[%s5949_s1 + $0x130] sm:$0xff]   ;;  %v2858_v6 = vld [vmem:[#allocation2 + $0x288] sm:$0xff] }
  0xc9   : > { %4317 = vmatprep.subr.bf16.mxu0 %v4768_v8  ;;  %v5507_v9 = vpack.c.bf16 %v2563_v46, %v2562_v45  ;;  %v2876_v45 = vld [vmem:[#allocation2 + $0x318] sm:$0xff]  ;;  %v2877_v46 = vld [vmem:[#allocation2 + $0x320] sm:$0xff] }
  0xcc   : > { %4318 = vmatpush3.bf16.msra.mxu0 %v4768_v8  ;;  %v4789_v8 = vld [vmem:[%s5949_s1 + $0x138] sm:$0xff]  }
  0xcd   : > { %4319 = vmatprep.subr.bf16.mxu0 %v4770_v62 }
  0xce   : > { %4064 = vmatmul.mubr.bf16.gmra.mrb[20].mxu1 %v5309_v2  ;;  %v4774_v2 = vld [vmem:[%s5949_s1 + $0x228] sm:$0xff]  }
  0xcf   : > { %4288 = vmatmul.mubr.bf16.gmra.mrb[4].mxu0 %v2581_v20  ;;  %4067 = vmatprep.mubr.bf16.mxu1 %v5325_v16  ;;  %v2560_v16 = vld [vmem:[#allocation2 + $0x1b0] sm:$0xff] }
  0xd0   : > { %4291 = vmatprep.mubr.bf16.mxu0 %v2582_v22  ;;  %4320 = vmatpush3.bf16.msra.mxu0 %v4770_v62  ;;  %v5505_v48 = vpack.c.bf16 %v2561_v44, %v2560_v16  ;;  %v2889_v62 = vpack.c.bf16 %v2862_v11, %v2861_v10  ;;  %v2863_v20 = vld [vmem:[#allocation2 + $0x2b0] sm:$0xff]  ;;  %v2864_v22 = vld [vmem:[#allocation2 + $0x2b8] sm:$0xff] }
  0xd1   : > { %4321 = vmatprep.subr.bf16.mxu0 %v4772_v52  ;;  %v2890_v0 = vpack.c.bf16 %v2864_v22, %v2863_v20  ;;  %v3284_v10 = vld [vmem:[%s5951_s3 + $0x78] sm:$0xff] }
  0xd4   : > { %4322 = vmatpush3.bf16.msra.mxu0 %v4772_v52  ;;  %v2865_v52 = vld [vmem:[#allocation2 + $0x2c0] sm:$0xff] }
  0xd5   : > { %4323 = vmatprep.subr.bf16.mxu0 %v4773_v30 }
  0xd6   : > { %4068 = vmatmul.mubr.bf16.gmra.mrb[24].mxu1 %v5329_v18  ;;  %v4776_v18 = vld [vmem:[%s5949_s1 + $0x238] sm:$0xff]  }
  0xd7   : > { %4292 = vmatmul.mubr.bf16.gmra.mrb[8].mxu0 %v2583_v32  ;;  %4071 = vmatprep.mubr.bf16.mxu1 %v5343_v36  ;;  %v2564_v36 = vld [vmem:[#allocation2 + $0x1d0] sm:$0xff] }
  0xd8   : > { %4295 = vmatprep.mubr.bf16.mxu0 %v2584_v34  ;;  %4324 = vmatpush3.bf16.msra.mxu0 %v4773_v30  ;;  %v5516_v31 = vpack.c.bf16 %v2565_v19, %v2564_v36  ;;  %v2872_v34 = vld [vmem:[#allocation2 + $0x2f8] sm:$0xff]  ;;  %v1654_v19 = vld [vmem:[#allocation2 + $0x210] sm:$0xff] }
  0xd9   : > { %4325 = vmatprep.subr.bf16.mxu0 %v4774_v2  ;;  %v2880_v36 = vld [vmem:[#allocation2 + $0x338] sm:$0xff] }
  0xdc   : > { %4326 = vmatpush3.bf16.msra.mxu0 %v4774_v2  ;;  %v2873_v2 = vld [vmem:[#allocation2 + $0x300] sm:$0xff] }
  0xdd   : > { %4327 = vmatprep.subr.bf16.mxu0 %v4775_v47 }
  0xde   : > { %4072 = vmatmul.mubr.bf16.gmra.mrb[28].mxu1 %v5347_v38  ;;  %v2569_v38 = vld [vmem:[#allocation2 + $0x1f8] sm:$0xff] }
  0xdf   : > { %4296 = vmatmul.mubr.bf16.gmra.mrb[12].mxu0 %v5505_v48  ;;  %4091 = vmatprep.mubr.bf16.mxu1 %v5303_v63  ;;  %v2568_v63 = vld [vmem:[#allocation2 + $0x1f0] sm:$0xff] }
  0xe0   : > { %4299 = vmatprep.mubr.bf16.mxu0 %v5507_v9  ;;  %4328 = vmatpush3.bf16.msra.mxu0 %v4775_v47  ;;  %v5528_v41 = vpack.c.bf16 %v2569_v38, %v2568_v63  ;;  %v2899_v38 = vpack.c.bf16 %v2882_v21, %v2881_v53 }
  0xe1   : > { %4329 = vmatprep.subr.bf16.mxu0 %v4776_v18 }
  0xe4   : > { %4330 = vmatpush3.bf16.msra.mxu0 %v4776_v18 }
  0xe6   : > { %4092 = vmatmul.mubr.bf16.vlgmr.msra.gmra.mrb[0].mxu1 %v5307_v1  ;;  %v5530_v1 = vpack.c.bf16 %v2571_v33, %v2570_v58  ;;  %v1657_v58 = vld [vmem:[#allocation2 + $0x228] sm:$0xff]  ;;  %v3269_v33 = vld [vmem:[%s5951_s3] sm:$0xff] }
  0xe7   : > { %4300 = vmatmul.mubr.bf16.gmra.mrb[16].mxu0 %v5516_v31  ;;  %4430 = vmatpush3.bf16.msra.mxu1 %v5481_v43 }
  0xe8   : > { %4095 = vmatprep.mubr.bf16.mxu1 %v5323_v15  ;;  %4303 = vmatprep.mubr.bf16.mxu0 %v5518_v56  ;;  %v4784_v15 = vld [vmem:[%s5949_s1 + $0x110] sm:$0xff]  }
  0xe9   : > { %4423 = vmatprep.subr.bf16.mxu1 %v4783_v57 }
  0xeb   : > { %4431 = vmatpush3.bf16.msra.mxu1 %v4783_v57  ;;  %v1656_v57 = vld [vmem:[#allocation2 + $0x220] sm:$0xff] }
  0xec   : > { %4424 = vmatprep.subr.bf16.mxu1 %v4784_v15 }
  0xee   : > { %4096 = vmatmul.mubr.bf16.gmra.mrb[4].mxu1 %v5327_v17  ;;  %v4786_v17 = vld [vmem:[%s5949_s1 + $0x120] sm:$0xff]  }
  0xef   : > { %4304 = vmatmul.mubr.bf16.gmra.mrb[20].mxu0 %v5528_v41  ;;  %4099 = vmatprep.mubr.bf16.mxu1 %v5341_v35  ;;  %v2853_v35 = vld [vmem:[#allocation2 + $0x260] sm:$0xff] }
  0xf0   : > { %4307 = vmatprep.mubr.bf16.mxu0 %v5530_v1  ;;  %4432 = vmatpush3.bf16.msra.mxu1 %v4784_v15  ;;  %v2885_v26 = vpack.c.bf16 %v2854_v4, %v2853_v35  ;;  %v3275_v4 = vld [vmem:[%s5951_s3 + $0x30] sm:$0xff] }
  0xf1   : > { %4425 = vmatprep.subr.bf16.mxu1 %v4785_v59 }
  0xf4   : > { %4433 = vmatpush3.bf16.msra.mxu1 %v4785_v59 }
  0xf5   : > { %4426 = vmatprep.subr.bf16.mxu1 %v4786_v17 }
  0xf6   : > { %4100 = vmatmul.mubr.bf16.gmra.mrb[8].mxu1 %v5345_v37  ;;  %v2856_v37 = vld [vmem:[#allocation2 + $0x278] sm:$0xff] }
  0xf7   : > { %4308 = vmatmul.mubr.bf16.gmra.mrb[24].mxu0 %v5285_v50  ;;  %4103 = vmatprep.mubr.bf16.mxu1 %v5359_v49  ;;  %v2855_v50 = vld [vmem:[#allocation2 + $0x270] sm:$0xff]  ;;  %v2857_v49 = vld [vmem:[#allocation2 + $0x280] sm:$0xff] }
  0xf8   : > { %4311 = vmatprep.mubr.bf16.mxu0 %v2592_v60  ;;  %4434 = vmatpush3.bf16.msra.mxu1 %v4786_v17  ;;  %v2886_v43 = vpack.c.bf16 %v2856_v37, %v2855_v50  ;;  %v2887_v51 = vpack.c.bf16 %v2858_v6, %v2857_v49  ;;  %v3273_v60 = vld [vmem:[%s5951_s3 + $0x20] sm:$0xff]  ;;  %v3274_v17 = vld [vmem:[%s5951_s3 + $0x28] sm:$0xff]  ;;  %v3279_v49 = vld [vmem:[%s5951_s3 + $0x50] sm:$0xff] }
  0xf9   : > { %4427 = vmatprep.subr.bf16.mxu1 %v4787_v25  ;;  %v4405_v35 = vpack.c.bf16 %v3274_v17, %v3273_v60  ;;  %v3278_v50 = vld [vmem:[%s5951_s3 + $0x48] sm:$0xff]  ;;  %v3280_v6 = vld [vmem:[%s5951_s3 + $0x58] sm:$0xff] }
  0xfc   : > { %4435 = vmatpush3.bf16.msra.mxu1 %v4787_v25  ;;  %v3276_v25 = vld [vmem:[%s5951_s3 + $0x38] sm:$0xff] }
  0xfd   : > { %4428 = vmatprep.subr.bf16.mxu1 %v4788_v5 }
  0xfe   : > { %4104 = vmatmul.mubr.bf16.gmra.mrb[12].mxu1 %v5361_v54  ;;  %v2859_v54 = vld [vmem:[#allocation2 + $0x290] sm:$0xff] }
  0xff   : > { %4312 = vmatmul.mubr.bf16.gmra.mrb[28].mxu0 %v5424_v42  ;;  %4107 = vmatprep.mubr.bf16.mxu1 %v5374_v61  ;;  %v2860_v61 = vld [vmem:[#allocation2 + $0x298] sm:$0xff] }
 0x100   : > { %4331 = vmatprep.mubr.bf16.mxu0 %v2885_v26  ;;  %4436 = vmatpush3.bf16.msra.mxu1 %v4788_v5  ;;  %v2888_v14 = vpack.c.bf16 %v2860_v61, %v2859_v54  ;;  %v4408_v26 = vpack.c.bf16 %v3276_v25, %v3275_v4  ;;  %v3277_v5 = vld [vmem:[%s5951_s3 + $0x40] sm:$0xff]  ;;  %v3283_v61 = vld [vmem:[%s5951_s3 + $0x70] sm:$0xff] }
 0x101   : > { %4429 = vmatprep.subr.bf16.mxu1 %v4789_v8  ;;  %v4411_v37 = vpack.c.bf16 %v3278_v50, %v3277_v5  ;;  %v4420_v11 = vpack.c.bf16 %v3284_v10, %v3283_v61 }
 0x104   : > { %4437 = vmatpush3.bf16.msra.mxu1 %v4789_v8  ;;  %v4414_v8 = vpack.c.bf16 %v3280_v6, %v3279_v49 }
 0x105   : > { %4398 = vmatprep.subr.bf16.mxu1 %v4799_v7 }
 0x106   : > { %4108 = vmatmul.mubr.bf16.gmra.mrb[16].mxu1 %v5376_v3  ;;  %v2866_v3 = vld [vmem:[#allocation2 + $0x2c8] sm:$0xff] }
 0x107   : > { %4332 = vmatmul.mubr.bf16.vlgmr.msra.gmra.mrb[0].mxu0 %v2886_v43  ;;  %4111 = vmatprep.mubr.bf16.mxu1 %v5390_v12  ;;  %v2891_v23 = vpack.c.bf16 %v2866_v3, %v2865_v52  ;;  %v2867_v12 = vld [vmem:[#allocation2 + $0x2d0] sm:$0xff]  ;;  %v3281_v43 = vld [vmem:[%s5951_s3 + $0x60] sm:$0xff] }
 0x108   : > { %4335 = vmatprep.mubr.bf16.mxu0 %v2887_v51  ;;  %v2892_v30 = vpack.c.bf16 %v2868_v24, %v2867_v12  ;;  %v3282_v51 = vld [vmem:[%s5951_s3 + $0x68] sm:$0xff] }
 0x109   : > { %v4417_v54 = vpack.c.bf16 %v3282_v51, %v3281_v43 }
 0x10e   : > { %4112 = vmatmul.mubr.bf16.gmra.mrb[20].mxu1 %v5392_v13  ;;  %v2870_v13 = vld [vmem:[#allocation2 + $0x2e8] sm:$0xff] }
 0x10f   : > { %4336 = vmatmul.mubr.bf16.gmra.mrb[4].mxu0 %v2888_v14  ;;  %4115 = vmatprep.mubr.bf16.mxu1 %v5404_v27  ;;  %v2893_v32 = vpack.c.bf16 %v2870_v13, %v2869_v29  ;;  %v2871_v27 = vld [vmem:[#allocation2 + $0x2f0] sm:$0xff] }
 0x110   : > { %4339 = vmatprep.mubr.bf16.mxu0 %v2889_v62  ;;  %v2894_v16 = vpack.c.bf16 %v2872_v34, %v2871_v27 }
 0x116   : > { %4116 = vmatmul.mubr.bf16.gmra.mrb[24].mxu1 %v5406_v28  ;;  %v2874_v28 = vld [vmem:[#allocation2 + $0x308] sm:$0xff] }
 0x117   : > { %4340 = vmatmul.mubr.bf16.gmra.mrb[8].mxu0 %v2890_v0  ;;  %4119 = vmatprep.mubr.bf16.mxu1 %v5418_v39  ;;  %v2895_v44 = vpack.c.bf16 %v2874_v28, %v2873_v2  ;;  %v2875_v39 = vld [vmem:[#allocation2 + $0x310] sm:$0xff]  ;;  %v5642_v2 = vld [vmem:[%s5950_s2] ss:$0 sm:$0xff] }
 0x118   : > { %4343 = vmatprep.mubr.bf16.mxu0 %v2891_v23  ;;  %v2896_v47 = vpack.c.bf16 %v2876_v45, %v2875_v39 }
 0x11e   : > { %4120 = vmatmul.mubr.bf16.gmra.mrb[28].mxu1 %v5457_v55  ;;  %v2878_v55 = vld [vmem:[#allocation2 + $0x328] sm:$0xff] }
 0x11f   : > { %4344 = vmatmul.mubr.bf16.gmra.mrb[12].mxu0 %v2892_v30  ;;  %4155 = vmatprep.mubr.bf16.mxu1 %v5505_v48  ;;  %v2897_v18 = vpack.c.bf16 %v2878_v55, %v2877_v46  ;;  %v2879_v48 = vld [vmem:[#allocation2 + $0x330] sm:$0xff] }
 0x120   : > { %4347 = vmatprep.mubr.bf16.mxu0 %v2893_v32 }
 0x126   : > { %4156 = vmatmul.mubr.bf16.vlgmr.msra.gmra.mrb[16].mxu1 %v5507_v9  ;;  %v1655_v9 = vld [vmem:[#allocation2 + $0x218] sm:$0xff] }
 0x127   : > { %4348 = vmatmul.mubr.bf16.gmra.mrb[16].mxu0 %v2894_v16  ;;  %4159 = vmatprep.mubr.bf16.mxu1 %v5516_v31  ;;  %v2898_v31 = vpack.c.bf16 %v2880_v36, %v2879_v48  ;;  %v1672_v63 = vpack.c.bf16 %v1655_v9, %v1654_v19 }
 0x128   : > { %4351 = vmatprep.mubr.bf16.mxu0 %v2895_v44 }
 0x12e   : > { %4160 = vmatmul.mubr.bf16.gmra.mrb[20].mxu1 %v5518_v56  ;;  %v1673_v56 = vpack.c.bf16 %v1657_v58, %v1656_v57 }
 0x12f   : > { %4352 = vmatmul.mubr.bf16.gmra.mrb[20].mxu0 %v2896_v47  ;;  %4163 = vmatprep.mubr.bf16.mxu1 %v5528_v41  ;;  %v3270_v41 = vld [vmem:[%s5951_s3 + $0x8] sm:$0xff] }
 0x130   : > { %4355 = vmatprep.mubr.bf16.mxu0 %v2897_v18  ;;  %v4399_v15 = vpack.c.bf16 %v3270_v41, %v3269_v33 }
 0x132   : > { %4400 = vmatpush3.bf16.msra.mxu1 %v4399_v15 }
 0x133   : > { %4401 = vmatprep.subr.bf16.mxu1 %v4799_v7 }
 0x136   : > { %4164 = vmatmul.mubr.bf16.gmra.mrb[24].mxu1 %v5530_v1  ;;  %v3271_v1 = vld [vmem:[%s5951_s3 + $0x10] sm:$0xff] }
 0x137   : > { %4356 = vmatmul.mubr.bf16.gmra.mrb[24].mxu0 %v2898_v31  ;;  %4167 = vmatprep.mubr.bf16.mxu1 %v1672_v63 }
 0x138   : > { %4359 = vmatprep.mubr.bf16.mxu0 %v2899_v38 }
 0x13e   : > { %4168 = vmatmul.mubr.bf16.gmra.mrb[28].mxu1 %v1673_v56 }
 0x13f   : > { %4360 = vmatmul.mubr.bf16.gmra.mrb[28].mxu0 %v5424_v42  ;;  %v3272_v42 = vld [vmem:[%s5951_s3 + $0x18] sm:$0xff]  ;;  %4395 = vmatprep.mubr.msk.f32.mxu1 %vm4800_vm0, %v5420_v40 }
 0x140   : > { %v4402_v59 = vpack.c.bf16 %v3272_v42, %v3271_v1 }
 0x142   : > { %4403 = vmatpush3.bf16.msra.mxu1 %v4402_v59 }
 0x143   : > { %4404 = vmatprep.subr.bf16.mxu1 %v4799_v7 }
 0x146   : > { %4406 = vmatpush3.bf16.msra.mxu1 %v4405_v35 }
 0x147   : > { %4407 = vmatprep.subr.bf16.mxu1 %v4799_v7 }
 0x14a   : > { %4409 = vmatpush3.bf16.msra.mxu1 %v4408_v26 }
 0x14b   : > { %4410 = vmatprep.subr.bf16.mxu1 %v4799_v7 }
 0x14e   : > { %4412 = vmatpush3.bf16.msra.mxu1 %v4411_v37 }
 0x14f   : > { %4413 = vmatprep.subr.bf16.mxu1 %v4799_v7 }
 0x152   : > { %4415 = vmatpush3.bf16.msra.mxu1 %v4414_v8 }
 0x153   : > { %4416 = vmatprep.subr.bf16.mxu1 %v4799_v7 }
 0x156   : > { %4418 = vmatpush3.bf16.msra.mxu1 %v4417_v54 }
 0x157   : > { %4419 = vmatprep.subr.bf16.mxu1 %v4799_v7 }
 0x15a   : > { %4421 = vmatpush3.bf16.msra.mxu1 %v4420_v11 }
 0x1b9   : > { %v4093_v14 = vpop.f32.mrb[0].mxu1 }
 0x1ba   : > { %v1467_v62 = vpop.f32.mrb[1].mxu1 }
 0x1bb   : > { %v4094_v20 = vpop.f32.mrb[2].mxu1 }
 0x1bc   : > { %v1470_v22 = vpop.f32.mrb[3].mxu1 }
 0x1c1   : > { %v4097_v52 = vpop.f32.mrb[4].mxu1 }
 0x1c2   : > { %v1483_v3 = vpop.f32.mrb[5].mxu1 }
 0x1c3   : > { %v4098_v0 = vpop.f32.mrb[6].mxu1 }
 0x1c4   : > { %v1486_v23 = vpop.f32.mrb[7].mxu1 }
 0x1c9   : > { %v4101_v12 = vpop.f32.mrb[8].mxu1 }
 0x1ca   : > { %v1499_v24 = vpop.f32.mrb[9].mxu1 }
 0x1cb   : > { %v4102_v29 = vpop.f32.mrb[10].mxu1 }
 0x1cc   : > { %v1502_v13 = vpop.f32.mrb[11].mxu1 }
 0x1d1   : > { %v4105_v30 = vpop.f32.mrb[12].mxu1 }
 0x1d2   : > { %v5633_v32 = vpop.f32.mrb[13].mxu1 }
 0x1d3   : > { %v5635_v27 = vpop.f32.mrb[14].mxu1 }
 0x1d4   : > { %v5637_v40 = vpop.f32.mrb[15].mxu1 }
 0x1da   : > { %v4333_v7 = vpop.f32.mrb[0].mxu0 }
 0x1db   : > { %v4438_v34 = vadd.f32 %v4333_v7, %v4093_v14  ;;  %v3000_v28 = vpop.f32.mrb[1].mxu0 }
 0x1dc   : > { %v4439_v16 = vadd.f32 %v3000_v28, %v1467_v62  ;;  %v4334_v44 = vpop.f32.mrb[2].mxu0 }
 0x1dd   : > { %v4440_v39 = vadd.f32 %v4334_v44, %v4094_v20  ;;  %v3003_v45 = vpop.f32.mrb[3].mxu0  ;;  %v5648_v47 = vadd.f32 %v4438_v34, %v5642_v2 }
 0x1de   : > { %v5645_v46 = vadd.f32 %v4439_v16, %v5642_v2  ;;  %v4441_v55 = vadd.f32 %v3003_v45, %v1470_v22 }
 0x1df   : > { %v5655_v36 = vadd.f32 %v4440_v39, %v5642_v2  ;;  %v3200_v31 = vmax.f32 %v5648_v47, 0.0 }
 0x1e0   : > { %v5651_v18 = vadd.f32 %v4441_v55, %v5642_v2  ;;  %v3198_v48 = vmax.f32 %v5645_v46, 0.0 }
 0x1e1   : > { %v3201_v33 = vmax.f32 %v5655_v36, 0.0 }
 0x1e2   : > { %v3199_v19 = vmax.f32 %v5651_v18, 0.0  ;;  %v4337_v9 = vpop.f32.mrb[4].mxu0 }
 0x1e3   : > { %v4442_v53 = vadd.f32 %v4337_v9, %v4097_v52  ;;  %v3016_v21 = vpop.f32.mrb[5].mxu0 }
 0x1e4   : > { %v3230_v63 = vadd.f32 %v3199_v19, %v3198_v48  ;;  %v4443_v38 = vadd.f32 %v3016_v21, %v1483_v3  ;;  %v4338_v57 = vpop.f32.mrb[6].mxu0 }
 0x1e5   : > { %v4444_v58 = vadd.f32 %v4338_v57, %v4098_v0  ;;  %v3019_v56 = vpop.f32.mrb[7].mxu0  ;;  %v5670_v42 = vadd.f32 %v4442_v53, %v5642_v2 }
 0x1e6   : > { %v3231_v41 = vadd.f32 %v3230_v63, %v3200_v31  ;;  %v5667_v15 = vadd.f32 %v4443_v38, %v5642_v2  ;;  %v4445_v1 = vadd.f32 %v3019_v56, %v1486_v23 }
 0x1e7   : > { %v5681_v4 = vadd.f32 %v4444_v58, %v5642_v2  ;;  %v3204_v37 = vmax.f32 %v5670_v42, 0.0 }
 0x1e8   : > { %v3202_v59 = vmax.f32 %v5667_v15, 0.0  ;;  %v3232_v60 = vadd.f32 %v3231_v41, %v3201_v33  ;;  %v5676_v17 = vadd.f32 %v4445_v1, %v5642_v2 }
 0x1e9   : > { %v3205_v54 = vmax.f32 %v5681_v4, 0.0 }
 0x1ea   : > { %v3233_v35 = vadd.f32 %v3232_v60, %v3202_v59  ;;  %v3203_v25 = vmax.f32 %v5676_v17, 0.0  ;;  %v4341_v26 = vpop.f32.mrb[8].mxu0 }
 0x1eb   : > { %v4446_v5 = vadd.f32 %v4341_v26, %v4101_v12  ;;  %v3032_v50 = vpop.f32.mrb[9].mxu0 }
 0x1ec   : > { %v3234_v49 = vadd.f32 %v3233_v35, %v3203_v25  ;;  %v4447_v6 = vadd.f32 %v3032_v50, %v1499_v24  ;;  %v4342_v8 = vpop.f32.mrb[10].mxu0 }
 0x1ed   : > { %v4448_v43 = vadd.f32 %v4342_v8, %v4102_v29  ;;  %v3035_v51 = vpop.f32.mrb[11].mxu0  ;;  %v5694_v14 = vadd.f32 %v4446_v5, %v5642_v2 }
 0x1ee   : > { %v3235_v61 = vadd.f32 %v3234_v49, %v3204_v37  ;;  %v5691_v10 = vadd.f32 %v4447_v6, %v5642_v2  ;;  %v4449_v11 = vadd.f32 %v3035_v51, %v1502_v13 }
 0x1ef   : > { %v5705_v3 = vadd.f32 %v4448_v43, %v5642_v2  ;;  %v3208_v29 = vmax.f32 %v5694_v14, 0.0 }
 0x1f0   : > { %v3206_v62 = vmax.f32 %v5691_v10, 0.0  ;;  %v3236_v20 = vadd.f32 %v3235_v61, %v3205_v54  ;;  %v5700_v22 = vadd.f32 %v4449_v11, %v5642_v2 }
 0x1f1   : > { %v3209_v44 = vmax.f32 %v5705_v3, 0.0 }
 0x1f2   : > { %v3237_v52 = vadd.f32 %v3236_v20, %v3206_v62  ;;  %v3207_v0 = vmax.f32 %v5700_v22, 0.0  ;;  %v4345_v23 = vpop.f32.mrb[12].mxu0 }
 0x1f3   : > { %v4450_v12 = vadd.f32 %v4345_v23, %v4105_v30  ;;  %v3048_v24 = vpop.f32.mrb[13].mxu0 }
 0x1f4   : > { %v3238_v13 = vadd.f32 %v3237_v52, %v3207_v0  ;;  %v4451_v7 = vadd.f32 %v3048_v24, %v5633_v32  ;;  %v4346_v34 = vpop.f32.mrb[14].mxu0 }
 0x1f5   : > { %v4452_v28 = vadd.f32 %v4346_v34, %v5635_v27  ;;  %v3051_v16 = vpop.f32.mrb[15].mxu0  ;;  %v5721_v55 = vadd.f32 %v4450_v12, %v5642_v2 }
 0x1f6   : > { %v3239_v39 = vadd.f32 %v3238_v13, %v3208_v29  ;;  %v5717_v45 = vadd.f32 %v4451_v7, %v5642_v2  ;;  %v4453_v30 = vadd.f32 %v3051_v16, %v5637_v40 }
 0x1f7   : > { %v5732_v63 = vadd.f32 %v4452_v28, %v5642_v2  ;;  %v3212_v1 = vmax.f32 %v5721_v55, 0.0 }
 0x1f8   : > { %v3210_v9 = vmax.f32 %v5717_v45, 0.0  ;;  %v3240_v32 = vadd.f32 %v3239_v39, %v3209_v44  ;;  %v5727_v27 = vadd.f32 %v4453_v30, %v5642_v2 }
 0x1f9   : > { %v4157_v53 = vpop.f32.mrb[16].mxu1  ;;  %v3213_v6 = vmax.f32 %v5732_v63, 0.0 }
 0x1fa   : > { %v3241_v21 = vadd.f32 %v3240_v32, %v3210_v9  ;;  %v3211_v40 = vmax.f32 %v5727_v27, 0.0  ;;  %v4349_v38 = vpop.f32.mrb[16].mxu0  ;;  %v1837_v57 = vpop.f32.mrb[17].mxu1 }
 0x1fb   : > { %v4454_v58 = vadd.f32 %v4349_v38, %v4157_v53  ;;  %v3064_v56 = vpop.f32.mrb[17].mxu0  ;;  %v4158_v41 = vpop.f32.mrb[18].mxu1 }
 0x1fc   : > { %v3242_v60 = vadd.f32 %v3241_v21, %v3211_v40  ;;  %v4455_v35 = vadd.f32 %v3064_v56, %v1837_v57  ;;  %v4350_v26 = vpop.f32.mrb[18].mxu0  ;;  %v1840_v5 = vpop.f32.mrb[19].mxu1 }
 0x1fd   : > { %v4456_v50 = vadd.f32 %v4350_v26, %v4158_v41  ;;  %v3067_v49 = vpop.f32.mrb[19].mxu0  ;;  %v5745_v61 = vadd.f32 %v4454_v58, %v5642_v2 }
 0x1fe   : > { %v3243_v8 = vadd.f32 %v3242_v60, %v3212_v1  ;;  %v5742_v43 = vadd.f32 %v4455_v35, %v5642_v2  ;;  %v4457_v51 = vadd.f32 %v3067_v49, %v1840_v5 }
 0x1ff   : > { %v5756_v24 = vadd.f32 %v4456_v50, %v5642_v2  ;;  %v5959_v30 = vmax.f32 %v5745_v61, 0.0 }
 0x200   : > { %v5962_v11 = vmax.f32 %v5742_v43, 0.0  ;;  %v3244_v20 = vadd.f32 %v3243_v8, %v3213_v6  ;;  %v5751_v52 = vadd.f32 %v4457_v51, %v5642_v2  ;;  %v5970_v17 = vmax.f32 %v5742_v43, 0.0 }
 0x201   : > { %v4161_v23 = vpop.f32.mrb[20].mxu1  ;;  %v5958_v56 = vmax.f32 %v5756_v24, 0.0  ;;  %v5973_v14 = vmax.f32 %v5756_v24, 0.0 }
 0x202   : > { %v3245_v12 = vadd.f32 %v3244_v20, %v5962_v11  ;;  %v5961_v13 = vmax.f32 %v5751_v52, 0.0  ;;  %v4353_v7 = vpop.f32.mrb[20].mxu0  ;;  %v1853_v34 = vpop.f32.mrb[21].mxu1 }
 0x203   : > { %v4458_v28 = vadd.f32 %v4353_v7, %v4161_v23  ;;  %v3080_v16 = vpop.f32.mrb[21].mxu0  ;;  %v4162_v39 = vpop.f32.mrb[22].mxu1 }
 0x204   : > { %v3246_v32 = vadd.f32 %v3245_v12, %v5961_v13  ;;  %v4459_v53 = vadd.f32 %v3080_v16, %v1853_v34  ;;  %v4354_v21 = vpop.f32.mrb[22].mxu0  ;;  %v1856_v38 = vpop.f32.mrb[23].mxu1 }
 0x205   : > { %v4460_v57 = vadd.f32 %v4354_v21, %v4162_v39  ;;  %v3083_v58 = vpop.f32.mrb[23].mxu0  ;;  %v5769_v26 = vadd.f32 %v4458_v28, %v5642_v2 }
 0x206   : > { %v3247_v41 = vadd.f32 %v3246_v32, %v5959_v30  ;;  %v5766_v60 = vadd.f32 %v4459_v53, %v5642_v2  ;;  %v4461_v35 = vadd.f32 %v3083_v58, %v1856_v38 }
 0x207   : > { %v5780_v20 = vadd.f32 %v4460_v57, %v5642_v2  ;;  %v5955_v39 = vmax.f32 %v5769_v26, 0.0 }
 0x208   : > { %v5954_v5 = vmax.f32 %v5766_v60, 0.0  ;;  %v3248_v50 = vadd.f32 %v3247_v41, %v5958_v56  ;;  %v5775_v49 = vadd.f32 %v4461_v35, %v5642_v2  ;;  %v5974_v22 = vmax.f32 %v5766_v60, 0.0 }
 0x209   : > { %v4165_v8 = vpop.f32.mrb[24].mxu1  ;;  %v5957_v57 = vmax.f32 %v5780_v20, 0.0  ;;  %v5977_v55 = vmax.f32 %v5780_v20, 0.0 }
 0x20a   : > { %v3249_v51 = vadd.f32 %v3248_v50, %v5954_v5  ;;  %v5956_v23 = vmax.f32 %v5775_v49, 0.0  ;;  %v4357_v12 = vpop.f32.mrb[24].mxu0  ;;  %v1869_v7 = vpop.f32.mrb[25].mxu1 }
 0x20b   : > { %v4462_v34 = vadd.f32 %v4357_v12, %v4165_v8  ;;  %v3096_v28 = vpop.f32.mrb[25].mxu0  ;;  %v4166_v16 = vpop.f32.mrb[26].mxu1 }
 0x20c   : > { %v3250_v32 = vadd.f32 %v3249_v51, %v5956_v23  ;;  %v4463_v53 = vadd.f32 %v3096_v28, %v1869_v7  ;;  %v4358_v21 = vpop.f32.mrb[26].mxu0  ;;  %v1872_v38 = vpop.f32.mrb[27].mxu1 }
 0x20d   : > { %v4464_v58 = vadd.f32 %v4358_v21, %v4166_v16  ;;  %v3099_v41 = vpop.f32.mrb[27].mxu0  ;;  %v5793_v12 = vadd.f32 %v4462_v34, %v5642_v2 }
 0x20e   : > { %v3251_v35 = vadd.f32 %v3250_v32, %v5955_v39  ;;  %v5790_v50 = vadd.f32 %v4463_v53, %v5642_v2  ;;  %v4465_v8 = vadd.f32 %v3099_v41, %v1872_v38 }
 0x20f   : > { %v5804_v32 = vadd.f32 %v4464_v58, %v5642_v2  ;;  %v5966_v23 = vmax.f32 %v5793_v12, 0.0 }
 0x210   : > { %v5960_v5 = vmax.f32 %v5790_v50, 0.0  ;;  %v3252_v51 = vadd.f32 %v3251_v35, %v5957_v57  ;;  %v5799_v7 = vadd.f32 %v4465_v8, %v5642_v2  ;;  %v5978_v27 = vmax.f32 %v5790_v50, 0.0 }
 0x211   : > { %v4169_v28 = vpop.f32.mrb[28].mxu1  ;;  %v5964_v58 = vmax.f32 %v5804_v32, 0.0 }
 0x212   : > { %v3253_v16 = vadd.f32 %v3252_v51, %v5960_v5  ;;  %v5967_v53 = vmax.f32 %v5799_v7, 0.0  ;;  %v4361_v21 = vpop.f32.mrb[28].mxu0  ;;  %v1885_v34 = vpop.f32.mrb[29].mxu1 }
 0x213   : > { %v4466_v38 = vadd.f32 %v4361_v21, %v4169_v28  ;;  %v3112_v41 = vpop.f32.mrb[29].mxu0  ;;  %v4170_v39 = vpop.f32.mrb[30].mxu1 }
 0x214   : > { %v3254_v35 = vadd.f32 %v3253_v16, %v5967_v53  ;;  %v4467_v8 = vadd.f32 %v3112_v41, %v1885_v34  ;;  %v4362_v57 = vpop.f32.mrb[30].mxu0  ;;  %v1888_v56 = vpop.f32.mrb[31].mxu1 }
 0x215   : > { %v4468_v30 = vadd.f32 %v4362_v57, %v4170_v39  ;;  %v3115_v51 = vpop.f32.mrb[31].mxu0  ;;  %v5817_v21 = vadd.f32 %v4466_v38, %v5642_v2 }
 0x216   : > { %v3255_v5 = vadd.f32 %v3254_v35, %v5966_v23  ;;  %v5814_v13 = vadd.f32 %v4467_v8, %v5642_v2  ;;  %v4469_v28 = vadd.f32 %v3115_v51, %v1888_v56 }
 0x217   : > { %v5828_v34 = vadd.f32 %v4468_v30, %v5642_v2  ;;  %v5968_v56 = vmax.f32 %v5817_v21, 0.0  ;;  %v5984_v20 = vmax.f32 %v5817_v21, 0.0 }
 0x218   : > { %v5963_v11 = vmax.f32 %v5814_v13, 0.0  ;;  %v3256_v16 = vadd.f32 %v3255_v5, %v5964_v58  ;;  %v5823_v39 = vadd.f32 %v4469_v28, %v5642_v2  ;;  %v5982_v24 = vmax.f32 %v5814_v13, 0.0 }
 0x219   : > { %v5969_v35 = vmax.f32 %v5828_v34, 0.0 }
 0x21a   : > { %v3257_v57 = vadd.f32 %v3256_v16, %v5963_v11  ;;  %v5965_v41 = vmax.f32 %v5823_v39, 0.0 }
 0x21c   : > { %v3258_v38 = vadd.f32 %v3257_v57, %v5965_v41  ;;  %v3285_v57 = vld [vmem:[%s5952_s4] sm:$0x1] }
 0x21e   : > { %v3259_v5 = vadd.f32 %v3258_v38, %v5968_v56 }
 0x220   : > { %v3260_v8 = vadd.f32 %v3259_v5, %v5969_v35 }
 0x222   : > { %v3261_v51 = vrot.slane %v3260_v8, 4 }
 0x224   : > { %v3262_v28 = vadd.f32 %v3261_v51, %v3260_v8  ;;  %v3361_v8 = vlaneseq }
 0x226   : > { %v3263_v16 = vrot.slane %v3262_v28, 2  ;;  %v3362_v51 = vshrl.u32 %v3361_v8, 7 }
 0x228   : > { %v3264_v2 = vadd.f32 %v3263_v16, %v3262_v28  ;;  %v3363_v28 = vsub.s32 0, %v3362_v51 }
 0x22a   : > { %v3265_v30 = vrot.slane %v3264_v2, 1 }
 0x22c   : > { %v3266_v11 = vadd.f32 %v3265_v30, %v3264_v2 }
 0x22e   : > { %v3268_v58 = vmul.f32 0.00390625, %v3266_v11 }
 0x230   : > { %4396 = vmatmul.mubr.f32.vlgmr.msra.gmra.mrb[32].mxu1 %v3268_v58 }
 0x303   : > { %v3352_v41 = vpop.f32.mrb[32].mxu1 }
 0x304   : > { %v3353_v23 = vadd.f32 %v3352_v41, %v3285_v57  ;;  %v4397_v53 = vpop.f32.mrb[33].mxu1 }
 0x306   : > { %v3356_v38 = vsub.f32 0.0, %v3353_v23 }
 0x308   : > { %v3357_v56 = vmul.f32 1.442695, %v3356_v38 }
 0x30a   : > { %4777 = vpow2.f32 %v3357_v56 }
 0x314   : > { %v4778_v5 = vpop.eup %4777 }
 0x315   : > { %v3359_v35 = vadd.f32 1.0, %v4778_v5 }
 0x317   : > { %4779 = vrcp.f32 %v3359_v35 }
 0x321   : > { %v4780_v16 = vpop.eup %4779 }
 0x322   : > { %v3364_v11 = vrot.slane %v4780_v16, %v3363_v28 }
 0x324   : > { %v3365_v23 = vmul.f32 %v3364_v11, %v3198_v48  ;;  %v3366_v53 = vmul.f32 %v3364_v11, %v3199_v19  ;;  %v3367_v58 = vmul.f32 %v3364_v11, %v3200_v31  ;;  %v3368_v41 = vmul.f32 %v3364_v11, %v3201_v33 }
 0x325   : > { %v3369_v56 = vmul.f32 %v3364_v11, %v3202_v59  ;;  %v3370_v46 = vmul.f32 %v3364_v11, %v3203_v25  ;;  %v3371_v48 = vmul.f32 %v3364_v11, %v3204_v37  ;;  %v3372_v18 = vmul.f32 %v3364_v11, %v3205_v54 }
 0x326   : > { %v3373_v47 = vmul.f32 %v3364_v11, %v3206_v62  ;;  %v3374_v36 = vmul.f32 %v3364_v11, %v3207_v0  ;;  %v3375_v19 = vmul.f32 %v3364_v11, %v3208_v29  ;;  %v3376_v31 = vmul.f32 %v3364_v11, %v3209_v44  ;;  %3397 = vst [vmem:[%s5847_s25] sm:$0xff] %v3365_v23 }
 0x327   : > { %3398 = vst [vmem:[%s5847_s25 + $0x8] sm:$0xff] %v3366_v53  ;;  %3399 = vst [vmem:[%s5847_s25 + $0x10] sm:$0xff] %v3367_v58  ;;  %v3377_v33 = vmul.f32 %v3364_v11, %v3210_v9  ;;  %v3378_v15 = vmul.f32 %v3364_v11, %v3211_v40  ;;  %v3379_v42 = vmul.f32 %v3364_v11, %v3212_v1  ;;  %v5971_v25 = vmax.f32 %v5751_v52, 0.0 }
 0x328   : > { %3400 = vst [vmem:[%s5847_s25 + $0x18] sm:$0xff] %v3368_v41  ;;  %v3380_v59 = vmul.f32 %v3364_v11, %v3213_v6  ;;  %3401 = vst [vmem:[%s5847_s25 + $0x20] sm:$0xff] %v3369_v56  ;;  %v3381_v4 = vmul.f32 %v3364_v11, %v5970_v17  ;;  %v5972_v54 = vmax.f32 %v5745_v61, 0.0  ;;  %v3384_v62 = vmul.f32 %v3364_v11, %v5973_v14 }
 0x329   : > { %3402 = vst [vmem:[%s5847_s25 + $0x28] sm:$0xff] %v3370_v46  ;;  %3403 = vst [vmem:[%s5847_s25 + $0x30] sm:$0xff] %v3371_v48  ;;  %v3382_v37 = vmul.f32 %v3364_v11, %v5971_v25  ;;  %v3385_v3 = vmul.f32 %v3364_v11, %v5974_v22  ;;  %v5975_v0 = vmax.f32 %v5775_v49, 0.0  ;;  %v5976_v44 = vmax.f32 %v5769_v26, 0.0 }
 0x32a   : > { %3404 = vst [vmem:[%s5847_s25 + $0x38] sm:$0xff] %v3372_v18  ;;  %v3383_v10 = vmul.f32 %v3364_v11, %v5972_v54  ;;  %3405 = vst [vmem:[%s5847_s25 + $0x40] sm:$0xff] %v3373_v47  ;;  %v3388_v9 = vmul.f32 %v3364_v11, %v5977_v55  ;;  %v3389_v63 = vmul.f32 %v3364_v11, %v5978_v27  ;;  %v5979_v40 = vmax.f32 %v5799_v7, 0.0 }
 0x32b   : > { %3406 = vst [vmem:[%s5847_s25 + $0x48] sm:$0xff] %v3374_v36  ;;  %3407 = vst [vmem:[%s5847_s25 + $0x50] sm:$0xff] %v3375_v19  ;;  %v3386_v29 = vmul.f32 %v3364_v11, %v5975_v0  ;;  %v3387_v45 = vmul.f32 %v3364_v11, %v5976_v44  ;;  %v5980_v6 = vmax.f32 %v5793_v12, 0.0  ;;  %v5981_v61 = vmax.f32 %v5804_v32, 0.0 }
 0x32c   : > { %3408 = vst [vmem:[%s5847_s25 + $0x58] sm:$0xff] %v3376_v31  ;;  %3409 = vst [vmem:[%s5847_s25 + $0x60] sm:$0xff] %v3377_v33  ;;  %v3390_v1 = vmul.f32 %v3364_v11, %v5979_v40  ;;  %v3393_v60 = vmul.f32 %v3364_v11, %v5982_v24  ;;  %v5983_v26 = vmax.f32 %v5823_v39, 0.0  ;;  %v3395_v50 = vmul.f32 %v3364_v11, %v5984_v20 }
 0x32d   : > { %3410 = vst [vmem:[%s5847_s25 + $0x68] sm:$0xff] %v3378_v15  ;;  %3411 = vst [vmem:[%s5847_s25 + $0x70] sm:$0xff] %v3379_v42  ;;  %v3391_v43 = vmul.f32 %v3364_v11, %v5980_v6  ;;  %v3392_v52 = vmul.f32 %v3364_v11, %v5981_v61  ;;  %v5985_v12 = vmax.f32 %v5828_v34, 0.0 }
 0x32e   : > { %3412 = vst [vmem:[%s5847_s25 + $0x78] sm:$0xff] %v3380_v59  ;;  %3413 = vst [vmem:[%s5847_s25 + $0x80] sm:$0xff] %v3381_v4  ;;  %v3394_v49 = vmul.f32 %v3364_v11, %v5983_v26 }
 0x32f   : > { %3414 = vst [vmem:[%s5847_s25 + $0x88] sm:$0xff] %v3382_v37  ;;  %3415 = vst [vmem:[%s5847_s25 + $0x90] sm:$0xff] %v3383_v10  ;;  %v3396_v7 = vmul.f32 %v3364_v11, %v5985_v12 }
 0x330   : > { %3416 = vst [vmem:[%s5847_s25 + $0x98] sm:$0xff] %v3384_v62  ;;  %3417 = vst [vmem:[%s5847_s25 + $0xa0] sm:$0xff] %v3385_v3 }
 0x331   : > { %3418 = vst [vmem:[%s5847_s25 + $0xa8] sm:$0xff] %v3386_v29  ;;  %3419 = vst [vmem:[%s5847_s25 + $0xb0] sm:$0xff] %v3387_v45 }
 0x332   : > { %3420 = vst [vmem:[%s5847_s25 + $0xb8] sm:$0xff] %v3388_v9  ;;  %3421 = vst [vmem:[%s5847_s25 + $0xc0] sm:$0xff] %v3389_v63 }
 0x333   : > { %3422 = vst [vmem:[%s5847_s25 + $0xc8] sm:$0xff] %v3390_v1  ;;  %3423 = vst [vmem:[%s5847_s25 + $0xd0] sm:$0xff] %v3391_v43 }
 0x334   : > { %3424 = vst [vmem:[%s5847_s25 + $0xd8] sm:$0xff] %v3392_v52  ;;  %3425 = vst [vmem:[%s5847_s25 + $0xe0] sm:$0xff] %v3393_v60 }
 0x335   : > { %3426 = vst [vmem:[%s5847_s25 + $0xe8] sm:$0xff] %v3394_v49  ;;  %3427 = vst [vmem:[%s5847_s25 + $0xf0] sm:$0xff] %v3395_v50 }
 0x336   : > { %3428 = vst [vmem:[%s5847_s25 + $0xf8] sm:$0xff] %v3396_v7 }
 0x337 PF: > { %s15_s18 = sadd.s32 1, %s4796_s18  }
 0x338   : > { %p12_p4 = scmp.ge.s32.totalorder %s15_s18, 4  }
 0x33a   :  { %14 = sbr.rel (!%p12_p4) target bundleno = 1 (0x1), region = 86 }

</bundles_post_ra>
